<compile_context>
chip_gen: v7x
topology: tpu7x:2x2x1
jax: 0.10.0
libtpu: 0.0.40
codegen_flags: <defaults>
</compile_context>

<pallas_src>
import functools
import math

import jax
import jax.numpy as jnp
from jax import lax
from jax.experimental import pallas as pl
from jax.experimental.pallas import tpu as pltpu

LN_EPS = 1e-5


def _vlm_cross_attn_kernel(
    text_ref, vis_ref,
    wq_ref, wk_ref, wv_ref, bq_ref, bk_ref, bv_ref,
    wo_ref, bo_ref,
    g1q_ref, g1s_ref, be1q_ref, be1s_ref,
    w1q_ref, w1s_ref, b1_ref,
    w2_ref, b2_ref,
    g2_ref, be2_ref,
    src3_ref, src2_ref, attn_ref,
    *, block_b, Lq, Lk,
):
    D = text_ref.shape[-1]
    Nq = block_b * Lq

    # ---- 2D activation slabs; cast to bf16 once for all MXU consumers ----
    q2 = text_ref[...]                               # (Nq, D)  f32
    kv2 = vis_ref[...]                               # (Nk, D)  f32
    q2b = q2.astype(jnp.bfloat16)
    kv2b = kv2.astype(jnp.bfloat16)

    # ---- single-head attention (nn.MultiheadAttention, num_heads=1) ----
    # wq/bq are pre-scaled by 1/sqrt(D) host-side; weights pre-transposed bf16,
    # accumulation and bias add in f32.
    Q = jnp.dot(q2b, wq_ref[...], preferred_element_type=jnp.float32) + bq_ref[...]
    K = jnp.dot(kv2b, wk_ref[...], preferred_element_type=jnp.float32) + bk_ref[...]
    V = jnp.dot(kv2b, wv_ref[...], preferred_element_type=jnp.float32) + bv_ref[...]

    Qb = Q.reshape(block_b, Lq, D).astype(jnp.bfloat16)
    Kb = K.reshape(block_b, Lk, D).astype(jnp.bfloat16)
    Vb = V.reshape(block_b, Lk, D).astype(jnp.bfloat16)

    scores = jnp.einsum("bqd,bkd->bqk", Qb, Kb,
                        preferred_element_type=jnp.float32)     # (bb, Lq, Lk)
    m = jnp.max(scores, axis=-1, keepdims=True)
    p = jnp.exp(scores - m)
    denom = jnp.sum(p, axis=-1, keepdims=True)
    # Exact reciprocal: these probs are returned to the caller and must sum to 1.
    probs = p * pl.reciprocal(denom, approx=False)               # f32 softmax

    # attn written as a 2D, lane-dense bf16 slab (halves the largest HBM store).
    attn_ref[...] = probs.reshape(Nq, Lk).astype(attn_ref.dtype)

    ctx = jnp.einsum("bqk,bkd->bqd", probs.astype(jnp.bfloat16), Vb,
                     preferred_element_type=jnp.float32)         # (bb, Lq, D)
    src2 = jnp.dot(ctx.reshape(Nq, D).astype(jnp.bfloat16), wo_ref[...],
                   preferred_element_type=jnp.float32) + bo_ref[...]
    src2_ref[...] = src2.astype(src2_ref.dtype)

    # ---- norm1 over concat([q, src2], -1) of width 2D (no concat needed) ----
    two_d = 2.0 * D
    mean1 = (jnp.sum(q2, axis=-1, keepdims=True)
             + jnp.sum(src2, axis=-1, keepdims=True)) / two_d
    var1 = (jnp.sum((q2 - mean1) ** 2, axis=-1, keepdims=True)
            + jnp.sum((src2 - mean1) ** 2, axis=-1, keepdims=True)) / two_d
    inv1 = lax.rsqrt(var1 + LN_EPS)
    qn = (q2 - mean1) * inv1 * g1q_ref[...] + be1q_ref[...]
    sn = (src2 - mean1) * inv1 * g1s_ref[...] + be1s_ref[...]

    # ---- gating MLP: linear1(2D -> FF) -> relu -> linear2(FF -> 1) -> sigmoid ----
    h = (jnp.dot(qn.astype(jnp.bfloat16), w1q_ref[...],
                 preferred_element_type=jnp.float32)
         + jnp.dot(sn.astype(jnp.bfloat16), w1s_ref[...],
                   preferred_element_type=jnp.float32)
         + b1_ref[...])
    h = jnp.maximum(h, 0.0)                                      # relu
    # linear2 as VPU multiply + lane reduce (1-column matmul wastes MXU lanes).
    alpha = jnp.sum(h * w2_ref[...], axis=-1, keepdims=True) + b2_ref[0]
    alpha = jax.nn.sigmoid(alpha)                                # (Nq, 1) f32

    # ---- gated residual + norm2 ----
    src3 = (1.0 - alpha) * q2 + alpha * src2
    mean2 = jnp.mean(src3, axis=-1, keepdims=True)
    var2 = jnp.mean((src3 - mean2) ** 2, axis=-1, keepdims=True)
    src3n = (src3 - mean2) * lax.rsqrt(var2 + LN_EPS) * g2_ref[...] + be2_ref[...]
    src3_ref[...] = src3n.astype(src3_ref.dtype)


def _tpu_generation():
    try:
        kind = jax.devices()[0].device_kind.lower()
    except Exception:
        return 6
    for ver in (7, 6, 5, 4):
        if f"v{ver}" in kind:
            return ver
    return 6


def _choose_block_b(B, Lq, Lk, target_rows):
    """Largest divisor of B so block_b*Lq ~ target MXU rows, grid_b>=2 if B>=2,
    and all 2D block row counts are sublane-aligned (or full extent)."""
    max_bb = B // 2 if B >= 2 else B                  # keep >=2 grid steps (megacore)
    cap = max(1, target_rows // max(Lq, 1))
    best = None
    for cand in range(1, min(max_bb, cap) + 1):
        if B % cand:
            continue
        ok_q = (cand * Lq) % 8 == 0 or cand * Lq == B * Lq
        ok_k = (cand * Lk) % 8 == 0 or cand * Lk == B * Lk
        if ok_q and ok_k:
            best = cand
    if best is not None:
        return best
    # Fallback: smallest aligned divisor, else full batch (full-extent blocks).
    for cand in range(1, B + 1):
        if B % cand:
            continue
        if (cand * Lq) % 8 == 0 and (cand * Lk) % 8 == 0:
            return cand
    return B


def _estimate_kernel_vmem(Nq, Nk, D, FF, Lk, attn_bytes):
    f32, bf16 = 4, 2
    io = 2 * (Nq * D + Nk * D) * f32                       # text, vis (double-buffered)
    io += 2 * (2 * Nq * D * f32 + Nq * Lk * attn_bytes)    # src3, src2, attn outs
    w = (4 * D * D + 2 * D * FF) * bf16 + (10 * D + 3 * FF) * f32   # single-buffered
    live = (6 * Nq * D + 2 * Nk * D + 3 * Nq * Lk + 2 * Nq * FF) * f32
    return io + w + live


def _vmem_limit_bytes(estimate, gen):
    cap = (48 << 20) if gen >= 7 else (100 << 20)
    try:
        cap = min(cap, int(pltpu.get_tpu_info().vmem_capacity_bytes) * 3 // 4)
    except Exception:
        pass
    want = max(32 << 20, 2 * estimate + (4 << 20))
    return int(min(want, cap))


def vlm_cross_attn_forward(text_emd, vis_emd, params, *, block_b=None,
                           attn_dtype=jnp.bfloat16):
    """forward_post: returns (src3, src2, attn)."""
    B, Lq, D = text_emd.shape
    _, Lk, _ = vis_emd.shape
    FF = params["w1"].shape[0]

    gen = _tpu_generation()
    target_rows = 256 if gen >= 6 else 128                 # MXU is 256-wide on v6e/v7x
    if block_b is None:
        block_b = _choose_block_b(B, Lq, Lk, target_rows)
    assert B % block_b == 0, "block_b must divide batch"
    grid_b = B // block_b
    Nq, Nk = block_b * Lq, block_b * Lk

    # ---- host-side re-layout: contraction-ready bf16 MXU weights ----
    wdt = jnp.bfloat16
    scale = 1.0 / math.sqrt(D)
    wq_t = (params["wq"].T * scale).astype(wdt)            # (D, D), scale folded in
    bq_s = params["bq"] * scale                            # (1, D)
    wk_t = params["wk"].T.astype(wdt)                      # (D, D)
    wv_t = params["wv"].T.astype(wdt)                      # (D, D)
    wo_t = params["wo"].T.astype(wdt)                      # (D, D)
    w1 = params["w1"]                                      # (FF, 2D)
    w1q = w1[:, :D].T.astype(wdt)                          # (D, FF)  [text half]
    w1s = w1[:, D:].T.astype(wdt)                          # (D, FF)  [src2 half]
    w2 = params["w2"]                                      # (1, FF)  f32 (VPU path)
    g1q, g1s = params["gamma1"][:, :D], params["gamma1"][:, D:]
    be1q, be1s = params["beta1"][:, :D], params["beta1"][:, D:]
    b2 = params["b2"].reshape((1,))                        # scalar -> SMEM

    # ---- flatten activations to lane/sublane-clean 2D slabs ----
    text2d = text_emd.reshape(B * Lq, D)
    vis2d = vis_emd.reshape(B * Lk, D)

    def const_spec(shape):
        # grid-invariant weight: single-buffered, constant index map
        nd = len(shape)
        return pl.BlockSpec(shape, lambda b, _nd=nd: (0,) * _nd,
                            pipeline_mode=pl.Buffered(1))

    in_specs = [
        pl.BlockSpec((Nq, D), lambda b: (b, 0)),                       # text
        pl.BlockSpec((Nk, D), lambda b: (b, 0)),                       # vis
        const_spec((D, D)), const_spec((D, D)), const_spec((D, D)),    # wq,wk,wv
        const_spec((1, D)), const_spec((1, D)), const_spec((1, D)),    # bq,bk,bv
        const_spec((D, D)), const_spec((1, D)),                        # wo, bo
        const_spec((1, D)), const_spec((1, D)),                        # g1q, g1s
        const_spec((1, D)), const_spec((1, D)),                        # be1q, be1s
        const_spec((D, FF)), const_spec((D, FF)), const_spec((1, FF)),  # w1q,w1s,b1
        const_spec((1, FF)),                                           # w2 (VPU)
        pl.BlockSpec(memory_space=pltpu.MemorySpace.SMEM),             # b2 scalar
        const_spec((1, D)), const_spec((1, D)),                        # g2, be2
    ]
    out_specs = [
        pl.BlockSpec((Nq, D), lambda b: (b, 0)),                       # src3
        pl.BlockSpec((Nq, D), lambda b: (b, 0)),                       # src2
        pl.BlockSpec((Nq, Lk), lambda b: (b, 0)),                      # attn (bf16)
    ]
    out_shape = [
        jax.ShapeDtypeStruct((B * Lq, D), jnp.float32),
        jax.ShapeDtypeStruct((B * Lq, D), jnp.float32),
        jax.ShapeDtypeStruct((B * Lq, Lk), attn_dtype),
    ]

    vmem_limit = _vmem_limit_bytes(
        _estimate_kernel_vmem(Nq, Nk, D, FF, Lk, jnp.dtype(attn_dtype).itemsize),
        gen,
    )

    kernel = functools.partial(_vlm_cross_attn_kernel,
                               block_b=block_b, Lq=Lq, Lk=Lk)

    f = pl.pallas_call(
        kernel,
        out_shape=out_shape,
        grid_spec=pltpu.PrefetchScalarGridSpec(
            num_scalar_prefetch=0,
            grid=(grid_b,),
            in_specs=in_specs,
            out_specs=out_specs,
        ),
        compiler_params=pltpu.CompilerParams(
            dimension_semantics=("parallel",),
            vmem_limit_bytes=vmem_limit,
        ),
    )

    src3f, src2f, attnf = f(
        text2d, vis2d,
        wq_t, wk_t, wv_t,
        bq_s, params["bk"], params["bv"],
        wo_t, params["bo"],
        g1q, g1s, be1q, be1s,
        w1q, w1s, params["b1"],
        w2, b2,
        params["gamma2"], params["beta2"],
    )
    return (src3f.reshape(B, Lq, D),
            src2f.reshape(B, Lq, D),
            attnf.reshape(B, Lq, Lk))


def make_params(key, d_model, dim_feedforward):
    ks = jax.random.split(key, 12)
    s = 0.05
    D, FF = d_model, dim_feedforward
    return {
        # in_proj of MultiheadAttention split into q/k/v pieces (PyTorch layout)
        "wq": jax.random.normal(ks[0], (D, D), jnp.float32) * s,
        "wk": jax.random.normal(ks[1], (D, D), jnp.float32) * s,
        "wv": jax.random.normal(ks[2], (D, D), jnp.float32) * s,
        "bq": jax.random.normal(ks[3], (1, D), jnp.float32) * s,
        "bk": jax.random.normal(ks[4], (1, D), jnp.float32) * s,
        "bv": jax.random.normal(ks[5], (1, D), jnp.float32) * s,
        "wo": jax.random.normal(ks[6], (D, D), jnp.float32) * s,
        "bo": jax.random.normal(ks[7], (1, D), jnp.float32) * s,
        # LayerNorm(2*d_model)
        "gamma1": jnp.ones((1, 2 * D), jnp.float32),
        "beta1": jnp.zeros((1, 2 * D), jnp.float32),
        # linear1: (2D -> FF), linear2: (FF -> 1)
        "w1": jax.random.normal(ks[8], (FF, 2 * D), jnp.float32) * s,
        "b1": jax.random.normal(ks[9], (1, FF), jnp.float32) * s,
        "w2": jax.random.normal(ks[10], (1, FF), jnp.float32) * s,
        "b2": jax.random.normal(ks[11], (1, 1), jnp.float32) * s,
        # LayerNorm(d_model)
        "gamma2": jnp.ones((1, D), jnp.float32),
        "beta2": jnp.zeros((1, D), jnp.float32),
    }


def _reference(text, vis, params):
    """Pure-JAX f32 forward_post reference (PyTorch semantics, eval mode)."""
    D = text.shape[-1]
    scale = 1.0 / math.sqrt(D)
    q = text @ params["wq"].T + params["bq"]
    k = vis @ params["wk"].T + params["bk"]
    v = vis @ params["wv"].T + params["bv"]
    scores = jnp.einsum("bqd,bkd->bqk", q * scale, k)
    probs = jax.nn.softmax(scores, axis=-1)
    ctx = jnp.einsum("bqk,bkd->bqd", probs, v)
    src2 = ctx @ params["wo"].T + params["bo"]
    src_vl = jnp.concatenate([text, src2], axis=-1)
    m1 = src_vl.mean(-1, keepdims=True)
    v1 = ((src_vl - m1) ** 2).mean(-1, keepdims=True)
    src_vl = (src_vl - m1) / jnp.sqrt(v1 + LN_EPS) * params["gamma1"] + params["beta1"]
    h = jnp.maximum(src_vl @ params["w1"].T + params["b1"], 0.0)
    alpha = jax.nn.sigmoid(h @ params["w2"].T + params["b2"])
    src3 = (1.0 - alpha) * text + alpha * src2
    m2 = src3.mean(-1, keepdims=True)
    v2 = ((src3 - m2) ** 2).mean(-1, keepdims=True)
    src3 = (src3 - m2) / jnp.sqrt(v2 + LN_EPS) * params["gamma2"] + params["beta2"]
    return src3, src2, probs


if __name__ == "__main__":
    B, Lq, Lk, D, FF = 2, 8, 16, 32, 64

    key = jax.random.PRNGKey(0)
    k_text, k_vis, k_params = jax.random.split(key, 3)

    text_emd = jax.random.normal(k_text, (B, Lq, D), jnp.float32)
    vis_emd = jax.random.normal(k_vis, (B, Lk, D), jnp.float32)
    params = make_params(k_params, D, FF)

    src3, src2, attn = vlm_cross_attn_forward(text_emd, vis_emd, params)
    jax.block_until_ready((src3, src2, attn))

    assert src3.shape == (B, Lq, D)
    assert src2.shape == (B, Lq, D)
    assert attn.shape == (B, Lq, Lk)
    assert bool(jnp.all(jnp.isfinite(src3)))
    assert bool(jnp.all(jnp.isfinite(src2)))

    # Loose numeric sanity vs. f32 reference (kernel uses bf16 MXU operands).
    r3, r2, ra = _reference(text_emd, vis_emd, params)
    assert float(jnp.max(jnp.abs(src3 - r3))) < 0.1
    assert float(jnp.max(jnp.abs(src2 - r2))) < 0.05
    assert float(jnp.max(jnp.abs(attn.astype(jnp.float32) - ra))) < 0.02

    print("KERNEL_OK")
</pallas_src>

<mosaic_0001>
module attributes {stable_mosaic.version = 11 : i64} {
  func.func @_vlm_cross_attn_kernel(%arg0: i32, %arg1: memref<8x32xf32, #tpu.memory_space<vmem>>, %arg2: memref<16x32xf32, #tpu.memory_space<vmem>>, %arg3: memref<32x32xbf16, #tpu.memory_space<vmem>>, %arg4: memref<32x32xbf16, #tpu.memory_space<vmem>>, %arg5: memref<32x32xbf16, #tpu.memory_space<vmem>>, %arg6: memref<1x32xf32, #tpu.memory_space<vmem>>, %arg7: memref<1x32xf32, #tpu.memory_space<vmem>>, %arg8: memref<1x32xf32, #tpu.memory_space<vmem>>, %arg9: memref<32x32xbf16, #tpu.memory_space<vmem>>, %arg10: memref<1x32xf32, #tpu.memory_space<vmem>>, %arg11: memref<1x32xf32, #tpu.memory_space<vmem>>, %arg12: memref<1x32xf32, #tpu.memory_space<vmem>>, %arg13: memref<1x32xf32, #tpu.memory_space<vmem>>, %arg14: memref<1x32xf32, #tpu.memory_space<vmem>>, %arg15: memref<32x64xbf16, #tpu.memory_space<vmem>>, %arg16: memref<32x64xbf16, #tpu.memory_space<vmem>>, %arg17: memref<1x64xf32, #tpu.memory_space<vmem>>, %arg18: memref<1x64xf32, #tpu.memory_space<vmem>>, %arg19: memref<1xf32, #tpu.memory_space<smem>>, %arg20: memref<1x32xf32, #tpu.memory_space<vmem>>, %arg21: memref<1x32xf32, #tpu.memory_space<vmem>>, %arg22: memref<8x32xf32, #tpu.memory_space<vmem>>, %arg23: memref<8x32xf32, #tpu.memory_space<vmem>>, %arg24: memref<8x16xbf16, #tpu.memory_space<vmem>>) attributes {dimension_semantics = [#tpu.dimension_semantics<parallel>], iteration_bounds = array<i64: 2>, scalar_prefetch = 0 : i64, scratch_operands = 0 : i64, tpu.core_type = #tpu.core_type<tc>, window_params = [{transform_indices = @transform_0, window_bounds = array<i64: 8, 32>}, {transform_indices = @transform_1, window_bounds = array<i64: 16, 32>}, {pipeline_mode = #tpu.pipeline_mode<synchronous>, transform_indices = @transform_2, window_bounds = array<i64: 32, 32>}, {pipeline_mode = #tpu.pipeline_mode<synchronous>, transform_indices = @transform_3, window_bounds = array<i64: 32, 32>}, {pipeline_mode = #tpu.pipeline_mode<synchronous>, transform_indices = @transform_4, window_bounds = array<i64: 32, 32>}, {pipeline_mode = #tpu.pipeline_mode<synchronous>, transform_indices = @transform_5, window_bounds = array<i64: 1, 32>}, {pipeline_mode = #tpu.pipeline_mode<synchronous>, transform_indices = @transform_6, window_bounds = array<i64: 1, 32>}, {pipeline_mode = #tpu.pipeline_mode<synchronous>, transform_indices = @transform_7, window_bounds = array<i64: 1, 32>}, {pipeline_mode = #tpu.pipeline_mode<synchronous>, transform_indices = @transform_8, window_bounds = array<i64: 32, 32>}, {pipeline_mode = #tpu.pipeline_mode<synchronous>, transform_indices = @transform_9, window_bounds = array<i64: 1, 32>}, {pipeline_mode = #tpu.pipeline_mode<synchronous>, transform_indices = @transform_10, window_bounds = array<i64: 1, 32>}, {pipeline_mode = #tpu.pipeline_mode<synchronous>, transform_indices = @transform_11, window_bounds = array<i64: 1, 32>}, {pipeline_mode = #tpu.pipeline_mode<synchronous>, transform_indices = @transform_12, window_bounds = array<i64: 1, 32>}, {pipeline_mode = #tpu.pipeline_mode<synchronous>, transform_indices = @transform_13, window_bounds = array<i64: 1, 32>}, {pipeline_mode = #tpu.pipeline_mode<synchronous>, transform_indices = @transform_14, window_bounds = array<i64: 32, 64>}, {pipeline_mode = #tpu.pipeline_mode<synchronous>, transform_indices = @transform_15, window_bounds = array<i64: 32, 64>}, {pipeline_mode = #tpu.pipeline_mode<synchronous>, transform_indices = @transform_16, window_bounds = array<i64: 1, 64>}, {pipeline_mode = #tpu.pipeline_mode<synchronous>, transform_indices = @transform_17, window_bounds = array<i64: 1, 64>}, {transform_indices = @transform_18, window_bounds = array<i64: 1>}, {pipeline_mode = #tpu.pipeline_mode<synchronous>, transform_indices = @transform_19, window_bounds = array<i64: 1, 32>}, {pipeline_mode = #tpu.pipeline_mode<synchronous>, transform_indices = @transform_20, window_bounds = array<i64: 1, 32>}, {transform_indices = @transform_21, window_bounds = array<i64: 8, 32>}, {transform_indices = @transform_22, window_bounds = array<i64: 8, 32>}, {transform_indices = @transform_23, window_bounds = array<i64: 8, 16>}]} {
    %c0 = arith.constant 0 : index
    %c0_0 = arith.constant 0 : index
    %0 = vector.load %arg1[%c0, %c0_0] : memref<8x32xf32, #tpu.memory_space<vmem>>, vector<8x32xf32>
    %c0_1 = arith.constant 0 : index
    %c0_2 = arith.constant 0 : index
    %1 = vector.load %arg2[%c0_1, %c0_2] : memref<16x32xf32, #tpu.memory_space<vmem>>, vector<16x32xf32>
    %2 = arith.truncf %0 : vector<8x32xf32> to vector<8x32xbf16>
    %3 = arith.truncf %1 : vector<16x32xf32> to vector<16x32xbf16>
    %c0_3 = arith.constant 0 : index
    %c0_4 = arith.constant 0 : index
    %4 = vector.load %arg3[%c0_3, %c0_4] : memref<32x32xbf16, #tpu.memory_space<vmem>>, vector<32x32xbf16>
    %cst = arith.constant dense<0.000000e+00> : vector<8x32xf32>
    %5 = tpu.matmul %2, %4, %cst {dimension_numbers = #tpu.dot_dimension_numbers<[1], [0], [0], [1], [0, 0, 1, 1], [], []>} : vector<8x32xbf16>, vector<32x32xbf16>, vector<8x32xf32> -> vector<8x32xf32>
    %c0_5 = arith.constant 0 : index
    %c0_6 = arith.constant 0 : index
    %6 = vector.load %arg6[%c0_5, %c0_6] : memref<1x32xf32, #tpu.memory_space<vmem>>, vector<1x32xf32>
    %7 = vector.broadcast %6 : vector<1x32xf32> to vector<8x32xf32>
    %8 = arith.addf %5, %7 : vector<8x32xf32>
    %c0_7 = arith.constant 0 : index
    %c0_8 = arith.constant 0 : index
    %9 = vector.load %arg4[%c0_7, %c0_8] : memref<32x32xbf16, #tpu.memory_space<vmem>>, vector<32x32xbf16>
    %cst_9 = arith.constant dense<0.000000e+00> : vector<16x32xf32>
    %10 = tpu.matmul %3, %9, %cst_9 {dimension_numbers = #tpu.dot_dimension_numbers<[1], [0], [0], [1], [0, 0, 1, 1], [], []>} : vector<16x32xbf16>, vector<32x32xbf16>, vector<16x32xf32> -> vector<16x32xf32>
    %c0_10 = arith.constant 0 : index
    %c0_11 = arith.constant 0 : index
    %11 = vector.load %arg7[%c0_10, %c0_11] : memref<1x32xf32, #tpu.memory_space<vmem>>, vector<1x32xf32>
    %12 = vector.broadcast %11 : vector<1x32xf32> to vector<16x32xf32>
    %13 = arith.addf %10, %12 : vector<16x32xf32>
    %c0_12 = arith.constant 0 : index
    %c0_13 = arith.constant 0 : index
    %14 = vector.load %arg5[%c0_12, %c0_13] : memref<32x32xbf16, #tpu.memory_space<vmem>>, vector<32x32xbf16>
    %cst_14 = arith.constant dense<0.000000e+00> : vector<16x32xf32>
    %15 = tpu.matmul %3, %14, %cst_14 {dimension_numbers = #tpu.dot_dimension_numbers<[1], [0], [0], [1], [0, 0, 1, 1], [], []>} : vector<16x32xbf16>, vector<32x32xbf16>, vector<16x32xf32> -> vector<16x32xf32>
    %c0_15 = arith.constant 0 : index
    %c0_16 = arith.constant 0 : index
    %16 = vector.load %arg8[%c0_15, %c0_16] : memref<1x32xf32, #tpu.memory_space<vmem>>, vector<1x32xf32>
    %17 = vector.broadcast %16 : vector<1x32xf32> to vector<16x32xf32>
    %18 = arith.addf %15, %17 : vector<16x32xf32>
    %19 = vector.shape_cast %8 : vector<8x32xf32> to vector<1x8x32xf32>
    %20 = arith.truncf %19 : vector<1x8x32xf32> to vector<1x8x32xbf16>
    %21 = vector.shape_cast %13 : vector<16x32xf32> to vector<1x16x32xf32>
    %22 = arith.truncf %21 : vector<1x16x32xf32> to vector<1x16x32xbf16>
    %23 = vector.shape_cast %18 : vector<16x32xf32> to vector<1x16x32xf32>
    %24 = arith.truncf %23 : vector<1x16x32xf32> to vector<1x16x32xbf16>
    "tpu.trace_start"() <{level = 10 : i32, message = "bqd,bkd->bqk"}> : () -> ()
    %cst_17 = arith.constant dense<0.000000e+00> : vector<1x8x16xf32>
    %25 = tpu.matmul %20, %22, %cst_17 {dimension_numbers = #tpu.dot_dimension_numbers<[2], [2], [1], [1], [0, 0, 0, 1, 1, 1], [0], [0]>} : vector<1x8x32xbf16>, vector<1x16x32xbf16>, vector<1x8x16xf32> -> vector<1x8x16xf32>
    "tpu.trace_stop"() : () -> ()
    %cst_18 = arith.constant dense<0xFF800000> : vector<1x8xf32>
    %26 = vector.multi_reduction <maximumf>, %25, %cst_18 [2] : vector<1x8x16xf32> to vector<1x8xf32>
    %27 = vector.shape_cast %26 : vector<1x8xf32> to vector<1x8x1xf32>
    %28 = vector.broadcast %27 : vector<1x8x1xf32> to vector<1x8x16xf32>
    %29 = arith.subf %25, %28 : vector<1x8x16xf32>
    %30 = math.exp %29 : vector<1x8x16xf32>
    %cst_19 = arith.constant dense<0.000000e+00> : vector<1x8xf32>
    %31 = vector.multi_reduction <add>, %30, %cst_19 [2] : vector<1x8x16xf32> to vector<1x8xf32>
    %32 = vector.shape_cast %31 : vector<1x8xf32> to vector<1x8x1xf32>
    %33 = tpu.reciprocal %32 : vector<1x8x1xf32> -> vector<1x8x1xf32>
    %34 = vector.broadcast %33 : vector<1x8x1xf32> to vector<1x8x16xf32>
    %35 = arith.mulf %30, %34 : vector<1x8x16xf32>
    %36 = vector.shape_cast %35 : vector<1x8x16xf32> to vector<8x16xf32>
    %37 = arith.truncf %36 : vector<8x16xf32> to vector<8x16xbf16>
    %c0_20 = arith.constant 0 : index
    %c0_21 = arith.constant 0 : index
    %38 = vector.load %arg24[%c0_20, %c0_21] : memref<8x16xbf16, #tpu.memory_space<vmem>>, vector<8x16xbf16>
    tpu.vector_store %arg24[%c0_20, %c0_21], %37 {strides = array<i32>} : memref<8x16xbf16, #tpu.memory_space<vmem>>, vector<8x16xbf16>,
    %39 = arith.truncf %35 : vector<1x8x16xf32> to vector<1x8x16xbf16>
    "tpu.trace_start"() <{level = 10 : i32, message = "bqk,bkd->bqd"}> : () -> ()
    %cst_22 = arith.constant dense<0.000000e+00> : vector<1x8x32xf32>
    %40 = tpu.matmul %39, %24, %cst_22 {dimension_numbers = #tpu.dot_dimension_numbers<[2], [1], [1], [2], [0, 0, 0, 1, 1, 2], [0], [0]>} : vector<1x8x16xbf16>, vector<1x16x32xbf16>, vector<1x8x32xf32> -> vector<1x8x32xf32>
    "tpu.trace_stop"() : () -> ()
    %41 = vector.shape_cast %40 : vector<1x8x32xf32> to vector<8x32xf32>
    %42 = arith.truncf %41 : vector<8x32xf32> to vector<8x32xbf16>
    %c0_23 = arith.constant 0 : index
    %c0_24 = arith.constant 0 : index
    %43 = vector.load %arg9[%c0_23, %c0_24] : memref<32x32xbf16, #tpu.memory_space<vmem>>, vector<32x32xbf16>
    %cst_25 = arith.constant dense<0.000000e+00> : vector<8x32xf32>
    %44 = tpu.matmul %42, %43, %cst_25 {dimension_numbers = #tpu.dot_dimension_numbers<[1], [0], [0], [1], [0, 0, 1, 1], [], []>} : vector<8x32xbf16>, vector<32x32xbf16>, vector<8x32xf32> -> vector<8x32xf32>
    %c0_26 = arith.constant 0 : index
    %c0_27 = arith.constant 0 : index
    %45 = vector.load %arg10[%c0_26, %c0_27] : memref<1x32xf32, #tpu.memory_space<vmem>>, vector<1x32xf32>
    %46 = vector.broadcast %45 : vector<1x32xf32> to vector<8x32xf32>
    %47 = arith.addf %44, %46 : vector<8x32xf32>
    %c0_28 = arith.constant 0 : index
    %c0_29 = arith.constant 0 : index
    %48 = vector.load %arg23[%c0_28, %c0_29] : memref<8x32xf32, #tpu.memory_space<vmem>>, vector<8x32xf32>
    tpu.vector_store %arg23[%c0_28, %c0_29], %47 {strides = array<i32>} : memref<8x32xf32, #tpu.memory_space<vmem>>, vector<8x32xf32>,
    %cst_30 = arith.constant dense<0.000000e+00> : vector<8xf32>
    %49 = vector.multi_reduction <add>, %0, %cst_30 [1] : vector<8x32xf32> to vector<8xf32>
    %50 = vector.shape_cast %49 : vector<8xf32> to vector<8x1xf32>
    %cst_31 = arith.constant dense<0.000000e+00> : vector<8xf32>
    %51 = vector.multi_reduction <add>, %47, %cst_31 [1] : vector<8x32xf32> to vector<8xf32>
    %52 = vector.shape_cast %51 : vector<8xf32> to vector<8x1xf32>
    %53 = arith.addf %50, %52 : vector<8x1xf32>
    %cst_32 = arith.constant 6.400000e+01 : f32
    %54 = vector.broadcast %cst_32 : f32 to vector<8x1xf32>
    %55 = arith.divf %53, %54 : vector<8x1xf32>
    %56 = vector.broadcast %55 : vector<8x1xf32> to vector<8x32xf32>
    %57 = arith.subf %0, %56 : vector<8x32xf32>
    %58 = arith.mulf %57, %57 : vector<8x32xf32>
    %cst_33 = arith.constant dense<0.000000e+00> : vector<8xf32>
    %59 = vector.multi_reduction <add>, %58, %cst_33 [1] : vector<8x32xf32> to vector<8xf32>
    %60 = vector.shape_cast %59 : vector<8xf32> to vector<8x1xf32>
    %61 = vector.broadcast %55 : vector<8x1xf32> to vector<8x32xf32>
    %62 = arith.subf %47, %61 : vector<8x32xf32>
    %63 = arith.mulf %62, %62 : vector<8x32xf32>
    %cst_34 = arith.constant dense<0.000000e+00> : vector<8xf32>
    %64 = vector.multi_reduction <add>, %63, %cst_34 [1] : vector<8x32xf32> to vector<8xf32>
    %65 = vector.shape_cast %64 : vector<8xf32> to vector<8x1xf32>
    %66 = arith.addf %60, %65 : vector<8x1xf32>
    %cst_35 = arith.constant 6.400000e+01 : f32
    %67 = vector.broadcast %cst_35 : f32 to vector<8x1xf32>
    %68 = arith.divf %66, %67 : vector<8x1xf32>
    %cst_36 = arith.constant 9.99999974E-6 : f32
    %69 = vector.broadcast %cst_36 : f32 to vector<8x1xf32>
    %70 = arith.addf %68, %69 : vector<8x1xf32>
    %71 = math.rsqrt %70 : vector<8x1xf32>
    %72 = vector.broadcast %55 : vector<8x1xf32> to vector<8x32xf32>
    %73 = arith.subf %0, %72 : vector<8x32xf32>
    %74 = vector.broadcast %71 : vector<8x1xf32> to vector<8x32xf32>
    %75 = arith.mulf %73, %74 : vector<8x32xf32>
    %c0_37 = arith.constant 0 : index
    %c0_38 = arith.constant 0 : index
    %76 = vector.load %arg11[%c0_37, %c0_38] : memref<1x32xf32, #tpu.memory_space<vmem>>, vector<1x32xf32>
    %77 = vector.broadcast %76 : vector<1x32xf32> to vector<8x32xf32>
    %78 = arith.mulf %75, %77 : vector<8x32xf32>
    %c0_39 = arith.constant 0 : index
    %c0_40 = arith.constant 0 : index
    %79 = vector.load %arg13[%c0_39, %c0_40] : memref<1x32xf32, #tpu.memory_space<vmem>>, vector<1x32xf32>
    %80 = vector.broadcast %79 : vector<1x32xf32> to vector<8x32xf32>
    %81 = arith.addf %78, %80 : vector<8x32xf32>
    %82 = vector.broadcast %55 : vector<8x1xf32> to vector<8x32xf32>
    %83 = arith.subf %47, %82 : vector<8x32xf32>
    %84 = vector.broadcast %71 : vector<8x1xf32> to vector<8x32xf32>
    %85 = arith.mulf %83, %84 : vector<8x32xf32>
    %c0_41 = arith.constant 0 : index
    %c0_42 = arith.constant 0 : index
    %86 = vector.load %arg12[%c0_41, %c0_42] : memref<1x32xf32, #tpu.memory_space<vmem>>, vector<1x32xf32>
    %87 = vector.broadcast %86 : vector<1x32xf32> to vector<8x32xf32>
    %88 = arith.mulf %85, %87 : vector<8x32xf32>
    %c0_43 = arith.constant 0 : index
    %c0_44 = arith.constant 0 : index
    %89 = vector.load %arg14[%c0_43, %c0_44] : memref<1x32xf32, #tpu.memory_space<vmem>>, vector<1x32xf32>
    %90 = vector.broadcast %89 : vector<1x32xf32> to vector<8x32xf32>
    %91 = arith.addf %88, %90 : vector<8x32xf32>
    %92 = arith.truncf %81 : vector<8x32xf32> to vector<8x32xbf16>
    %c0_45 = arith.constant 0 : index
    %c0_46 = arith.constant 0 : index
    %93 = vector.load %arg15[%c0_45, %c0_46] : memref<32x64xbf16, #tpu.memory_space<vmem>>, vector<32x64xbf16>
    %cst_47 = arith.constant dense<0.000000e+00> : vector<8x64xf32>
    %94 = tpu.matmul %92, %93, %cst_47 {dimension_numbers = #tpu.dot_dimension_numbers<[1], [0], [0], [1], [0, 0, 1, 1], [], []>} : vector<8x32xbf16>, vector<32x64xbf16>, vector<8x64xf32> -> vector<8x64xf32>
    %95 = arith.truncf %91 : vector<8x32xf32> to vector<8x32xbf16>
    %c0_48 = arith.constant 0 : index
    %c0_49 = arith.constant 0 : index
    %96 = vector.load %arg16[%c0_48, %c0_49] : memref<32x64xbf16, #tpu.memory_space<vmem>>, vector<32x64xbf16>
    %cst_50 = arith.constant dense<0.000000e+00> : vector<8x64xf32>
    %97 = tpu.matmul %95, %96, %cst_50 {dimension_numbers = #tpu.dot_dimension_numbers<[1], [0], [0], [1], [0, 0, 1, 1], [], []>} : vector<8x32xbf16>, vector<32x64xbf16>, vector<8x64xf32> -> vector<8x64xf32>
    %98 = arith.addf %94, %97 : vector<8x64xf32>
    %c0_51 = arith.constant 0 : index
    %c0_52 = arith.constant 0 : index
    %99 = vector.load %arg17[%c0_51, %c0_52] : memref<1x64xf32, #tpu.memory_space<vmem>>, vector<1x64xf32>
    %100 = vector.broadcast %99 : vector<1x64xf32> to vector<8x64xf32>
    %101 = arith.addf %98, %100 : vector<8x64xf32>
    %cst_53 = arith.constant 0.000000e+00 : f32
    %102 = vector.broadcast %cst_53 : f32 to vector<8x64xf32>
    %103 = arith.maximumf %101, %102 : vector<8x64xf32>
    %c0_54 = arith.constant 0 : index
    %c0_55 = arith.constant 0 : index
    %104 = vector.load %arg18[%c0_54, %c0_55] : memref<1x64xf32, #tpu.memory_space<vmem>>, vector<1x64xf32>
    %105 = vector.broadcast %104 : vector<1x64xf32> to vector<8x64xf32>
    %106 = arith.mulf %103, %105 : vector<8x64xf32>
    %cst_56 = arith.constant dense<0.000000e+00> : vector<8xf32>
    %107 = vector.multi_reduction <add>, %106, %cst_56 [1] : vector<8x64xf32> to vector<8xf32>
    %108 = vector.shape_cast %107 : vector<8xf32> to vector<8x1xf32>
    %c0_57 = arith.constant 0 : index
    %109 = memref.load %arg19[%c0_57] : memref<1xf32, #tpu.memory_space<smem>>
    %110 = vector.broadcast %109 : f32 to vector<8x1xf32>
    %111 = arith.addf %108, %110 : vector<8x1xf32>
    %112 = arith.negf %111 : vector<8x1xf32>
    %113 = math.exp %112 : vector<8x1xf32>
    %cst_58 = arith.constant 1.000000e+00 : f32
    %114 = vector.broadcast %cst_58 : f32 to vector<8x1xf32>
    %115 = arith.addf %114, %113 : vector<8x1xf32>
    %116 = arith.divf %114, %115 : vector<8x1xf32>
    %cst_59 = arith.constant 1.000000e+00 : f32
    %117 = vector.broadcast %cst_59 : f32 to vector<8x1xf32>
    %118 = arith.subf %117, %116 : vector<8x1xf32>
    %119 = vector.broadcast %118 : vector<8x1xf32> to vector<8x32xf32>
    %120 = arith.mulf %119, %0 : vector<8x32xf32>
    %121 = vector.broadcast %116 : vector<8x1xf32> to vector<8x32xf32>
    %122 = arith.mulf %121, %47 : vector<8x32xf32>
    %123 = arith.addf %120, %122 : vector<8x32xf32>
    %cst_60 = arith.constant dense<0.000000e+00> : vector<8xf32>
    %124 = vector.multi_reduction <add>, %123, %cst_60 [1] : vector<8x32xf32> to vector<8xf32>
    %125 = vector.shape_cast %124 : vector<8xf32> to vector<8x1xf32>
    %cst_61 = arith.constant 3.200000e+01 : f32
    %126 = vector.broadcast %cst_61 : f32 to vector<8x1xf32>
    %127 = arith.divf %125, %126 : vector<8x1xf32>
    %128 = vector.broadcast %127 : vector<8x1xf32> to vector<8x32xf32>
    %129 = arith.subf %123, %128 : vector<8x32xf32>
    %130 = arith.mulf %129, %129 : vector<8x32xf32>
    %cst_62 = arith.constant dense<0.000000e+00> : vector<8xf32>
    %131 = vector.multi_reduction <add>, %130, %cst_62 [1] : vector<8x32xf32> to vector<8xf32>
    %132 = vector.shape_cast %131 : vector<8xf32> to vector<8x1xf32>
    %cst_63 = arith.constant 3.200000e+01 : f32
    %133 = vector.broadcast %cst_63 : f32 to vector<8x1xf32>
    %134 = arith.divf %132, %133 : vector<8x1xf32>
    %135 = vector.broadcast %127 : vector<8x1xf32> to vector<8x32xf32>
    %136 = arith.subf %123, %135 : vector<8x32xf32>
    %cst_64 = arith.constant 9.99999974E-6 : f32
    %137 = vector.broadcast %cst_64 : f32 to vector<8x1xf32>
    %138 = arith.addf %134, %137 : vector<8x1xf32>
    %139 = math.rsqrt %138 : vector<8x1xf32>
    %140 = vector.broadcast %139 : vector<8x1xf32> to vector<8x32xf32>
    %141 = arith.mulf %136, %140 : vector<8x32xf32>
    %c0_65 = arith.constant 0 : index
    %c0_66 = arith.constant 0 : index
    %142 = vector.load %arg20[%c0_65, %c0_66] : memref<1x32xf32, #tpu.memory_space<vmem>>, vector<1x32xf32>
    %143 = vector.broadcast %142 : vector<1x32xf32> to vector<8x32xf32>
    %144 = arith.mulf %141, %143 : vector<8x32xf32>
    %c0_67 = arith.constant 0 : index
    %c0_68 = arith.constant 0 : index
    %145 = vector.load %arg21[%c0_67, %c0_68] : memref<1x32xf32, #tpu.memory_space<vmem>>, vector<1x32xf32>
    %146 = vector.broadcast %145 : vector<1x32xf32> to vector<8x32xf32>
    %147 = arith.addf %144, %146 : vector<8x32xf32>
    %c0_69 = arith.constant 0 : index
    %c0_70 = arith.constant 0 : index
    %148 = vector.load %arg22[%c0_69, %c0_70] : memref<8x32xf32, #tpu.memory_space<vmem>>, vector<8x32xf32>
    tpu.vector_store %arg22[%c0_69, %c0_70], %147 {strides = array<i32>} : memref<8x32xf32, #tpu.memory_space<vmem>>, vector<8x32xf32>,
    return
  }
  func.func @transform_0(%arg0: i32) -> (i32, i32) {
    %c0_i32 = arith.constant 0 : i32
    %c0_i32_0 = arith.constant 0 : i32
    return %arg0, %c0_i32 : i32, i32
  }
  func.func @transform_1(%arg0: i32) -> (i32, i32) {
    %c0_i32 = arith.constant 0 : i32
    %c0_i32_0 = arith.constant 0 : i32
    return %arg0, %c0_i32 : i32, i32
  }
  func.func @transform_2(%arg0: i32) -> (i32, i32) {
    %c0_i32 = arith.constant 0 : i32
    %c0_i32_0 = arith.constant 0 : i32
    %c0_i32_1 = arith.constant 0 : i32
    return %c0_i32, %c0_i32_0 : i32, i32
  }
  func.func @transform_3(%arg0: i32) -> (i32, i32) {
    %c0_i32 = arith.constant 0 : i32
    %c0_i32_0 = arith.constant 0 : i32
    %c0_i32_1 = arith.constant 0 : i32
    return %c0_i32, %c0_i32_0 : i32, i32
  }
  func.func @transform_4(%arg0: i32) -> (i32, i32) {
    %c0_i32 = arith.constant 0 : i32
    %c0_i32_0 = arith.constant 0 : i32
    %c0_i32_1 = arith.constant 0 : i32
    return %c0_i32, %c0_i32_0 : i32, i32
  }
  func.func @transform_5(%arg0: i32) -> (i32, i32) {
    %c0_i32 = arith.constant 0 : i32
    %c0_i32_0 = arith.constant 0 : i32
    %c0_i32_1 = arith.constant 0 : i32
    return %c0_i32, %c0_i32_0 : i32, i32
  }
  func.func @transform_6(%arg0: i32) -> (i32, i32) {
    %c0_i32 = arith.constant 0 : i32
    %c0_i32_0 = arith.constant 0 : i32
    %c0_i32_1 = arith.constant 0 : i32
    return %c0_i32, %c0_i32_0 : i32, i32
  }
  func.func @transform_7(%arg0: i32) -> (i32, i32) {
    %c0_i32 = arith.constant 0 : i32
    %c0_i32_0 = arith.constant 0 : i32
    %c0_i32_1 = arith.constant 0 : i32
    return %c0_i32, %c0_i32_0 : i32, i32
  }
  func.func @transform_8(%arg0: i32) -> (i32, i32) {
    %c0_i32 = arith.constant 0 : i32
    %c0_i32_0 = arith.constant 0 : i32
    %c0_i32_1 = arith.constant 0 : i32
    return %c0_i32, %c0_i32_0 : i32, i32
  }
  func.func @transform_9(%arg0: i32) -> (i32, i32) {
    %c0_i32 = arith.constant 0 : i32
    %c0_i32_0 = arith.constant 0 : i32
    %c0_i32_1 = arith.constant 0 : i32
    return %c0_i32, %c0_i32_0 : i32, i32
  }
  func.func @transform_10(%arg0: i32) -> (i32, i32) {
    %c0_i32 = arith.constant 0 : i32
    %c0_i32_0 = arith.constant 0 : i32
    %c0_i32_1 = arith.constant 0 : i32
    return %c0_i32, %c0_i32_0 : i32, i32
  }
  func.func @transform_11(%arg0: i32) -> (i32, i32) {
    %c0_i32 = arith.constant 0 : i32
    %c0_i32_0 = arith.constant 0 : i32
    %c0_i32_1 = arith.constant 0 : i32
    return %c0_i32, %c0_i32_0 : i32, i32
  }
  func.func @transform_12(%arg0: i32) -> (i32, i32) {
    %c0_i32 = arith.constant 0 : i32
    %c0_i32_0 = arith.constant 0 : i32
    %c0_i32_1 = arith.constant 0 : i32
    return %c0_i32, %c0_i32_0 : i32, i32
  }
  func.func @transform_13(%arg0: i32) -> (i32, i32) {
    %c0_i32 = arith.constant 0 : i32
    %c0_i32_0 = arith.constant 0 : i32
    %c0_i32_1 = arith.constant 0 : i32
    return %c0_i32, %c0_i32_0 : i32, i32
  }
  func.func @transform_14(%arg0: i32) -> (i32, i32) {
    %c0_i32 = arith.constant 0 : i32
    %c0_i32_0 = arith.constant 0 : i32
    %c0_i32_1 = arith.constant 0 : i32
    return %c0_i32, %c0_i32_0 : i32, i32
  }
  func.func @transform_15(%arg0: i32) -> (i32, i32) {
    %c0_i32 = arith.constant 0 : i32
    %c0_i32_0 = arith.constant 0 : i32
    %c0_i32_1 = arith.constant 0 : i32
    return %c0_i32, %c0_i32_0 : i32, i32
  }
  func.func @transform_16(%arg0: i32) -> (i32, i32) {
    %c0_i32 = arith.constant 0 : i32
    %c0_i32_0 = arith.constant 0 : i32
    %c0_i32_1 = arith.constant 0 : i32
    return %c0_i32, %c0_i32_0 : i32, i32
  }
  func.func @transform_17(%arg0: i32) -> (i32, i32) {
    %c0_i32 = arith.constant 0 : i32
    %c0_i32_0 = arith.constant 0 : i32
    %c0_i32_1 = arith.constant 0 : i32
    return %c0_i32, %c0_i32_0 : i32, i32
  }
  func.func @transform_18(%arg0: i32) -> i32 {
    %c0_i32 = arith.constant 0 : i32
    %c0_i32_0 = arith.constant 0 : i32
    return %c0_i32 : i32
  }
  func.func @transform_19(%arg0: i32) -> (i32, i32) {
    %c0_i32 = arith.constant 0 : i32
    %c0_i32_0 = arith.constant 0 : i32
    %c0_i32_1 = arith.constant 0 : i32
    return %c0_i32, %c0_i32_0 : i32, i32
  }
  func.func @transform_20(%arg0: i32) -> (i32, i32) {
    %c0_i32 = arith.constant 0 : i32
    %c0_i32_0 = arith.constant 0 : i32
    %c0_i32_1 = arith.constant 0 : i32
    return %c0_i32, %c0_i32_0 : i32, i32
  }
  func.func @transform_21(%arg0: i32) -> (i32, i32) {
    %c0_i32 = arith.constant 0 : i32
    %c0_i32_0 = arith.constant 0 : i32
    return %arg0, %c0_i32 : i32, i32
  }
  func.func @transform_22(%arg0: i32) -> (i32, i32) {
    %c0_i32 = arith.constant 0 : i32
    %c0_i32_0 = arith.constant 0 : i32
    return %arg0, %c0_i32 : i32, i32
  }
  func.func @transform_23(%arg0: i32) -> (i32, i32) {
    %c0_i32 = arith.constant 0 : i32
    %c0_i32_0 = arith.constant 0 : i32
    return %arg0, %c0_i32 : i32, i32
  }
}

</mosaic_0001>

<bundles_post_ra>
// kernel: tpu_custom_call.1
= control target key start
LH: loop header
LB: loop body
LE: loop exit
PB: predicated region body
PF: predicated region fallthrough
CT: control target
= control target key end

     0   :  { %s3373_s0 = inlined_call_operand.hbm [shape: f32[16,32], index: 0, kind: input, shape index: {}]   ;;  %s3374_s1 = inlined_call_operand.hbm [shape: f32[32,32], index: 1, kind: input, shape index: {}]   ;;  %s3375_s2 = inlined_call_operand.hbm [shape: bf16[32,32], index: 2, kind: input, shape index: {}]   ;;  %s3376_s3 = inlined_call_operand.hbm [shape: bf16[32,32], index: 3, kind: input, shape index: {}]   ;;  %s3377_s4 = inlined_call_operand.vmem [shape: bf16[32,32], index: 4, kind: input, shape index: {}]   ;;  %s3378_s5 = inlined_call_operand.vmem [shape: f32[1,32], index: 5, kind: input, shape index: {}]   ;;  %s3379_s6 = inlined_call_operand.hbm [shape: f32[1,32], index: 6, kind: input, shape index: {}]   ;;  %s3380_s7 = inlined_call_operand.hbm [shape: f32[1,32], index: 7, kind: input, shape index: {}]   ;;  %s3381_s8 = inlined_call_operand.vmem [shape: bf16[32,32], index: 8, kind: input, shape index: {}]   ;;  %s3382_s9 = inlined_call_operand.hbm [shape: f32[1,32], index: 9, kind: input, shape index: {}]   ;;  %s3383_s10 = inlined_call_operand.hbm [shape: f32[1,32], index: 10, kind: input, shape index: {}]   ;;  %s3384_s11 = inlined_call_operand.hbm [shape: f32[1,32], index: 11, kind: input, shape index: {}]   ;;  %s3385_s12 = inlined_call_operand.hbm [shape: f32[1,32], index: 12, kind: input, shape index: {}]   ;;  %s3386_s13 = inlined_call_operand.vmem [shape: f32[1,32], index: 13, kind: input, shape index: {}]   ;;  %s3387_s14 = inlined_call_operand.vmem [shape: bf16[32,64], index: 14, kind: input, shape index: {}]   ;;  %s3388_s15 = inlined_call_operand.hbm [shape: bf16[32,64], index: 15, kind: input, shape index: {}]   ;;  %s3389_s16 = inlined_call_operand.vmem [shape: f32[1,64], index: 16, kind: input, shape index: {}]   ;;  %s3390_s17 = inlined_call_operand.vmem [shape: f32[1,64], index: 17, kind: input, shape index: {}]   ;;  %s3391_s18 = inlined_call_operand.<no memory space> [shape: f32[1], index: 18, kind: input, shape index: {}]   ;;  %s3392_s19 = inlined_call_operand.vmem [shape: f32[1,32], index: 19, kind: input, shape index: {}]   ;;  %s3393_s20 = inlined_call_operand.vmem [shape: f32[1,32], index: 20, kind: input, shape index: {}]   ;;  %s3394_s21 = inlined_call_operand.hbm [shape: f32[16,32], index: 21, kind: output, shape index: {0}]   ;;  %s3395_s22 = inlined_call_operand.hbm [shape: f32[16,32], index: 22, kind: output, shape index: {1}]   ;;  %s3396_s23 = inlined_call_operand.hbm [shape: bf16[16,16], index: 23, kind: output, shape index: {2}]  }
   0x1   :  { %3417 = sst [smem:[#allocation34_spill]] %s3373_s0 }
   0x2   :  { %3418 = sst [smem:[#allocation35_spill]] %s3374_s1 }
   0x3   :  { %3419 = sst [smem:[#allocation36_spill]] %s3375_s2 }
   0x4   :  { %3420 = sst [smem:[#allocation37_spill]] %s3376_s3 }
   0x5   :  { %3421 = sst [smem:[#allocation38_spill]] %s3377_s4 }
   0x6   :  { %3422 = sst [smem:[#allocation39_spill]] %s3378_s5 }
   0x7   :  { %3423 = sst [smem:[#allocation40_spill]] %s3379_s6 }
   0x8   :  { %3424 = sst [smem:[#allocation41_spill]] %s3380_s7 }
   0x9   :  { %3425 = sst [smem:[#allocation42_spill]] %s3381_s8 }
   0xa   :  { %3426 = sst [smem:[#allocation43_spill]] %s3382_s9 }
   0xb   :  { %3427 = sst [smem:[#allocation44_spill]] %s3383_s10 }
   0xc   :  { %3428 = sst [smem:[#allocation45_spill]] %s3384_s11 }
   0xd   :  { %3429 = sst [smem:[#allocation46_spill]] %s3385_s12 }
   0xe   :  { %3430 = sst [smem:[#allocation47_spill]] %s3386_s13 }
   0xf   :  { %3431 = sst [smem:[#allocation48_spill]] %s3388_s15 }
  0x10   :  { %3432 = sst [smem:[#allocation49_spill]] %s3389_s16 }
  0x11   :  { %3433 = sst [smem:[#allocation50_spill]] %s3390_s17 }
  0x12   :  { %3434 = sst [smem:[#allocation51_spill]] %s3392_s19 }
  0x13   :  { %3435 = sst [smem:[#allocation52_spill]] %s3393_s20 }
  0x14   :  { %3436 = sst [smem:[#allocation53_spill]] %s3394_s21 }
  0x15   :  { %3437 = sst [smem:[#allocation54_spill]] %s3395_s22 }
  0x16   :  { %3438 = sst [smem:[#allocation55_spill]] %s3396_s23 }
  0x17   :  { %29 = sst [smem:[#allocation2]] %s3391_s18 }
  0x18   :  { %30 = vsyncpa [#allocation4], 0 }
  0x19   :  { %32 = vsyncpa [#allocation4 + $0x1], 0 }
  0x1a   :  { %33 = vsyncpa [#allocation7], 0 }
  0x1b   :  { %35 = vsyncpa [#allocation7 + $0x1], 0 }
  0x1c   :  { %36 = vsyncpa [#allocation10], 0 }
  0x1d   :  { %37 = vsyncpa [#allocation13], 0 }
  0x1e   :  { %38 = vsyncpa [#allocation16], 0 }
  0x1f   :  { %39 = vsyncpa [#allocation19], 0 }
  0x20   :  { %40 = vsyncpa [#allocation5], 0 }
  0x21   :  { %42 = vsyncpa [#allocation5 + $0x1], 0 }
  0x22   :  { %43 = vsyncpa [#allocation23], 0 }
  0x23   :  { %45 = vsyncpa [#allocation23 + $0x1], 0  ;;  %s2759_s24 = smov 0   ;;  %s2761_s25 = smov 0  }
  0x24   :  { %s2763_s5 = smov 0   ;;  %s2765_s1 = smov 0  }
  0x25 LB: > { %s2616_s18 = smov [#allocation8]   ;;  %s2780_s2 = sadd.s32 4294967295, %s2614_s1   ;;  %s2614_s1 = sphi %s2765_s1, %s3491_s1   ;;  %s2610_s5 = sphi %s2763_s5, %s3490_s5   ;;  %s2606_s25 = sphi %s2761_s25, %s3489_s25   ;;  %s2602_s24 = sphi %s2759_s24, %s3488_s24  }
  0x26   : > { %s597_s26 = sshll.u32 %s2616_s18, 4  ;;  %p1815_p0 = scmp.ge.s32.totalorder %s2614_s1, 1  ;;  %s2785_s26 = int_to_ptr.vmem [resolvable:$true] %s597_s26 }
  0x27   : > { %p3409_p1 = scmp.eq.s32.totalorder %s2780_s2, 0  ;;  %p585_p2 = scmp.lt.s32.totalorder %s2614_s1, 3 }
  0x28   : > { %s2617_s27 = smov [#allocation9]   ;;  %s2618_s29 = smov [#allocation12]  }
  0x29   : > { %p2787_p3 = pnand %p1815_p0, %p585_p2  ;;  %s610_s7 = sshll.u32 %s2617_s27, 4  ;;  %s2800_s7 = int_to_ptr.vmem [resolvable:$true] %s610_s7 }
  0x2a   : > { %s641_s3 = sshll.u32 %s2618_s29, 4  ;;  %s3441_s30 = sld [smem:[#allocation36_spill]]  ;;  %s2802_s3 = int_to_ptr.vmem [resolvable:$true] %s641_s3 }
  0x2b   : > { %s3439_s6 = scalar_select %p2787_p3, 1, 0 }
  0x2c   : > { %p2016_p5 = pneg %p2787_p3 }
  0x2e   : > { %p2796_p6 = pnand %p2016_p5, %p3409_p1 }
  0x30   : > { %s2152_s18 = scalar_lea.hbm %s3441_s30, 256  ;;  %p2812_p8 = pneg %p2796_p6 }
  0x31   : > { %p2153_p7 = scmp.ne.s32.totalorder %s3441_s30, %s2152_s18  ;;  %p2159_p11 = scmp.lt.u32.totalorder %s2152_s18, %s3441_s30 }
  0x33   : > { %p2155_p9 = pnand %p2812_p8, %p2153_p7 }
  0x35   : > { %p2156_p10 = pneg %p2155_p9 }
  0x37   : > { %p2161_p12 = pnand %p2159_p11, %p2156_p10 }
  0x39   : > { %2164 = shalt.err (!%p2161_p12)
}
  0x3a   : > { %s2165_s20 = scalar_lea.vmem %s2785_s26, 256  ;;  %p2173_p5 = scmp.lt.s32.totalorder %s2785_s26, %s2785_s26 }
  0x3b   : > { %p2166_p13 = scmp.ne.s32.totalorder %s2785_s26, %s2165_s20  ;;  %p2174_p4 = scmp.lt.s32.totalorder %s2165_s20, %s2165_s20 }
  0x3d   : > { %p2168_p0 = pnand %p2166_p13, %p2812_p8  ;;  %p2175_p7 = por %p2174_p4, %p2173_p5 }
  0x3f   : > { %p2169_p2 = pneg %p2168_p0 }
  0x41   : > { %p2176_p9 = pnand %p2175_p7, %p2169_p2 }
  0x43   : > { %2179 = shalt.err (!%p2176_p9)
}
  0x44   : > { %s3407_s21 = smov 64   ;;  %s3408_s19 = smov 4  }
  0x45   : > { %2019 = dma.hbm_to_vmem [thread:$0]  (!%p2796_p6), %s3441_s30, 256, %s2785_s26, [#allocation7], %s3407_s21, %s3407_s21, %s3408_s19  }
  0x46   : > { %s3443_s23 = sld [smem:[#allocation37_spill]] }
  0x4c   : > { %s2180_s20 = scalar_lea.hbm %s3443_s23, 256 }
  0x4d   : > { %p2181_p4 = scmp.ne.s32.totalorder %s3443_s23, %s2180_s20  ;;  %p2187_p12 = scmp.lt.u32.totalorder %s2180_s20, %s3443_s23 }
  0x4f   : > { %p2183_p10 = pnand %p2181_p4, %p2812_p8 }
  0x51   : > { %p2184_p11 = pneg %p2183_p10 }
  0x53   : > { %p2189_p13 = pnand %p2187_p12, %p2184_p11 }
  0x55   : > { %2192 = shalt.err (!%p2189_p13)
}
  0x56   : > { %s2193_s26 = scalar_lea.vmem %s2800_s7, 256  ;;  %p2201_p7 = scmp.lt.s32.totalorder %s2800_s7, %s2800_s7 }
  0x57   : > { %p2194_p0 = scmp.ne.s32.totalorder %s2800_s7, %s2193_s26  ;;  %p2202_p9 = scmp.lt.s32.totalorder %s2193_s26, %s2193_s26 }
  0x59   : > { %p2196_p2 = pnand %p2194_p0, %p2812_p8  ;;  %p2203_p4 = por %p2202_p9, %p2201_p7 }
  0x5b   : > { %p2197_p5 = pneg %p2196_p2 }
  0x5d   : > { %p2204_p10 = pnand %p2203_p4, %p2197_p5 }
  0x5f   : > { %2207 = shalt.err (!%p2204_p10)
}
  0x60   : > { %2022 = dma.hbm_to_vmem [thread:$0]  (!%p2796_p6), %s3443_s23, 256, %s2800_s7, [#allocation10], %s3407_s21, %s3407_s21, %s3408_s19  }
  0x61   : > { %s3444_s0 = sld [smem:[#allocation41_spill]] }
  0x67   : > { %s2208_s4 = scalar_lea.hbm %s3444_s0, 16 }
  0x68   : > { %p2209_p11 = scmp.ne.s32.totalorder %s3444_s0, %s2208_s4  ;;  %p2215_p0 = scmp.lt.u32.totalorder %s2208_s4, %s3444_s0 }
  0x6a   : > { %p2211_p12 = pnand %p2209_p11, %p2812_p8 }
  0x6c   : > { %p2212_p13 = pneg %p2211_p12 }
  0x6e   : > { %p2217_p2 = pnand %p2215_p0, %p2212_p13 }
  0x70   : > { %2220 = shalt.err (!%p2217_p2)
}
  0x71   : > { %s2221_s7 = scalar_lea.vmem %s2802_s3, 16  ;;  %s2228_s13 = scalar_lea.vmem %s2802_s3, 32 }
  0x72   : > { %p2222_p5 = scmp.ne.s32.totalorder %s2802_s3, %s2221_s7  ;;  %p2229_p4 = scmp.lt.s32.totalorder %s2802_s3, %s2802_s3 }
  0x73   : > { %p2230_p10 = scmp.lt.s32.totalorder %s2228_s13, %s2221_s7 }
  0x74   : > { %p2224_p7 = pnand %p2222_p5, %p2812_p8 }
  0x75   : > { %p2231_p11 = por %p2230_p10, %p2229_p4 }
  0x76   : > { %p2225_p9 = pneg %p2224_p7 }
  0x78   : > { %p2232_p12 = pnand %p2231_p11, %p2225_p9 }
  0x7a   : > { %2235 = shalt.err (!%p2232_p12)
}
  0x7b   : > { %2028 = dma.hbm_to_vmem [thread:$0]  (!%p2796_p6), %s3444_s0, 16, %s2802_s3, [#allocation13]  }
  0x7c   : > { %s2621_s22 = smov [#allocation15]   ;;  %s2622_s18 = smov [#allocation18]  }
  0x7d   : > { %s666_s4 = sshll.u32 %s2621_s22, 4  ;;  %s688_s29 = sshll.u32 %s2622_s18, 4  ;;  %s667_s4 = int_to_ptr.vmem [resolvable:$true] %s666_s4  ;;  %s689_s29 = int_to_ptr.vmem [resolvable:$true] %s688_s29 }
  0x7e   : > { %s3445_s10 = sld [smem:[#allocation44_spill]] }
  0x84   : > { %s2236_s7 = scalar_lea.hbm %s3445_s10, 16 }
  0x85   : > { %p2237_p13 = scmp.ne.s32.totalorder %s3445_s10, %s2236_s7  ;;  %p2243_p5 = scmp.lt.u32.totalorder %s2236_s7, %s3445_s10 }
  0x87   : > { %p2239_p0 = pnand %p2237_p13, %p2812_p8 }
  0x89   : > { %p2240_p2 = pneg %p2239_p0 }
  0x8b   : > { %p2245_p7 = pnand %p2243_p5, %p2240_p2 }
  0x8d   : > { %2248 = shalt.err (!%p2245_p7)
}
  0x8e   : > { %s2249_s3 = scalar_lea.vmem %s667_s4, 16  ;;  %s2256_s17 = scalar_lea.vmem %s667_s4, 32 }
  0x8f   : > { %p2250_p9 = scmp.ne.s32.totalorder %s667_s4, %s2249_s3  ;;  %p2257_p11 = scmp.lt.s32.totalorder %s667_s4, %s667_s4 }
  0x90   : > { %p2258_p12 = scmp.lt.s32.totalorder %s2256_s17, %s2249_s3 }
  0x91   : > { %p2252_p4 = pnand %p2250_p9, %p2812_p8 }
  0x92   : > { %p2259_p1 = por %p2258_p12, %p2257_p11 }
  0x93   : > { %p2253_p10 = pneg %p2252_p4 }
  0x95   : > { %p2260_p3 = pnand %p2259_p1, %p2253_p10 }
  0x97   : > { %2263 = shalt.err (!%p2260_p3)
}
  0x98   : > { %2034 = dma.hbm_to_vmem [thread:$0]  (!%p2796_p6), %s3445_s10, 16, %s667_s4, [#allocation16]  }
  0x99   : > { %s3446_s12 = sld [smem:[#allocation46_spill]] }
  0x9f   : > { %s2264_s20 = scalar_lea.hbm %s3446_s12, 16 }
  0xa0   : > { %p2265_p13 = scmp.ne.s32.totalorder %s3446_s12, %s2264_s20  ;;  %p2271_p3 = scmp.lt.u32.totalorder %s2264_s20, %s3446_s12 }
  0xa2   : > { %p2267_p0 = pnand %p2265_p13, %p2812_p8 }
  0xa4   : > { %p2268_p1 = pneg %p2267_p0 }
  0xa6   : > { %p2273_p2 = pnand %p2271_p3, %p2268_p1 }
  0xa8   : > { %2276 = shalt.err (!%p2273_p2)
}
  0xa9   : > { %s2277_s3 = scalar_lea.vmem %s689_s29, 16  ;;  %s2284_s4 = scalar_lea.vmem %s689_s29, 32 }
  0xaa   : > { %p2278_p5 = scmp.ne.s32.totalorder %s689_s29, %s2277_s3  ;;  %p2285_p4 = scmp.lt.s32.totalorder %s689_s29, %s689_s29 }
  0xab   : > { %p2286_p10 = scmp.lt.s32.totalorder %s2284_s4, %s2277_s3 }
  0xac   : > { %p2280_p7 = pnand %p2278_p5, %p2812_p8 }
  0xad   : > { %p2287_p11 = por %p2286_p10, %p2285_p4 }
  0xae   : > { %p2281_p9 = pneg %p2280_p7 }
  0xb0   : > { %p2288_p12 = pnand %p2287_p11, %p2281_p9 }
  0xb2   : > { %2291 = shalt.err (!%p2288_p12)
}
  0xb3   : > { %2040 = dma.hbm_to_vmem [thread:$0]  (!%p2796_p6), %s3446_s12, 16, %s689_s29, [#allocation19]  }
  0xb4   : > { %s2623_s22 = smov [#allocation11]   ;;  %s2624_s18 = smov [#allocation14]  }
  0xb5   : > { %s630_s19 = sshll.u32 %s2623_s22, 4  ;;  %s655_s20 = sshll.u32 %s2624_s18, 4  ;;  %s631_s19 = int_to_ptr.vmem [resolvable:$true] %s630_s19  ;;  %s656_s20 = int_to_ptr.vmem [resolvable:$true] %s655_s20 }
  0xb6   : > { %s3447_s13 = sld [smem:[#allocation40_spill]] }
  0xbc   : > { %s2292_s16 = scalar_lea.hbm %s3447_s13, 16 }
  0xbd   : > { %p2293_p13 = scmp.ne.s32.totalorder %s3447_s13, %s2292_s16  ;;  %p2299_p3 = scmp.lt.u32.totalorder %s2292_s16, %s3447_s13 }
  0xbf   : > { %p2295_p0 = pnand %p2293_p13, %p2812_p8 }
  0xc1   : > { %p2296_p1 = pneg %p2295_p0 }
  0xc3   : > { %p2301_p2 = pnand %p2299_p3, %p2296_p1 }
  0xc5   : > { %2304 = shalt.err (!%p2301_p2)
}
  0xc6   : > { %s2305_s29 = scalar_lea.vmem %s631_s19, 16  ;;  %s2312_s21 = scalar_lea.vmem %s631_s19, 32 }
  0xc7   : > { %p2306_p5 = scmp.ne.s32.totalorder %s631_s19, %s2305_s29  ;;  %p2313_p4 = scmp.lt.s32.totalorder %s631_s19, %s631_s19 }
  0xc8   : > { %p2314_p10 = scmp.lt.s32.totalorder %s2312_s21, %s2305_s29 }
  0xc9   : > { %p2308_p7 = pnand %p2306_p5, %p2812_p8 }
  0xca   : > { %p2315_p11 = por %p2314_p10, %p2313_p4 }
  0xcb   : > { %p2309_p9 = pneg %p2308_p7 }
  0xcd   : > { %p2316_p12 = pnand %p2315_p11, %p2309_p9 }
  0xcf   : > { %2319 = shalt.err (!%p2316_p12)
}
  0xd0   : > { %2025 = dma.hbm_to_vmem [thread:$0]  (!%p2796_p6), %s3447_s13, 16, %s631_s19, [#allocation10]  }
  0xd1   : > { %s3448_s9 = sld [smem:[#allocation43_spill]] }
  0xd7   : > { %s2320_s7 = scalar_lea.hbm %s3448_s9, 16 }
  0xd8   : > { %p2321_p13 = scmp.ne.s32.totalorder %s3448_s9, %s2320_s7  ;;  %p2327_p3 = scmp.lt.u32.totalorder %s2320_s7, %s3448_s9 }
  0xda   : > { %p2323_p0 = pnand %p2321_p13, %p2812_p8 }
  0xdc   : > { %p2324_p1 = pneg %p2323_p0 }
  0xde   : > { %p2329_p2 = pnand %p2327_p3, %p2324_p1 }
  0xe0   : > { %2332 = shalt.err (!%p2329_p2)
}
  0xe1   : > { %s2333_s29 = scalar_lea.vmem %s656_s20, 16  ;;  %s2340_s19 = scalar_lea.vmem %s656_s20, 32 }
  0xe2   : > { %p2334_p5 = scmp.ne.s32.totalorder %s656_s20, %s2333_s29  ;;  %p2341_p4 = scmp.lt.s32.totalorder %s656_s20, %s656_s20 }
  0xe3   : > { %p2342_p10 = scmp.lt.s32.totalorder %s2340_s19, %s2333_s29 }
  0xe4   : > { %p2336_p7 = pnand %p2334_p5, %p2812_p8 }
  0xe5   : > { %p2343_p11 = por %p2342_p10, %p2341_p4 }
  0xe6   : > { %p2337_p9 = pneg %p2336_p7 }
  0xe8   : > { %p2344_p12 = pnand %p2343_p11, %p2337_p9 }
  0xea   : > { %2347 = shalt.err (!%p2344_p12)
}
  0xeb   : > { %2031 = dma.hbm_to_vmem [thread:$0]  (!%p2796_p6), %s3448_s9, 16, %s656_s20, [#allocation13]  }
  0xec   : > { %s2625_s18 = smov [#allocation17]   ;;  %s2626_s26 = smov [#allocation20]  }
  0xed   : > { %s677_s0 = sshll.u32 %s2625_s18, 4  ;;  %s704_s7 = sshll.u32 %s2626_s26, 4  ;;  %s678_s0 = int_to_ptr.vmem [resolvable:$true] %s677_s0  ;;  %s705_s7 = int_to_ptr.vmem [resolvable:$true] %s704_s7 }
  0xee   : > { %s3449_s11 = sld [smem:[#allocation45_spill]] }
  0xf4   : > { %s2348_s4 = scalar_lea.hbm %s3449_s11, 16 }
  0xf5   : > { %p2349_p13 = scmp.ne.s32.totalorder %s3449_s11, %s2348_s4  ;;  %p2355_p3 = scmp.lt.u32.totalorder %s2348_s4, %s3449_s11 }
  0xf7   : > { %p2351_p0 = pnand %p2349_p13, %p2812_p8 }
  0xf9   : > { %p2352_p1 = pneg %p2351_p0 }
  0xfb   : > { %p2357_p2 = pnand %p2355_p3, %p2352_p1 }
  0xfd   : > { %2360 = shalt.err (!%p2357_p2)
}
  0xfe   : > { %s2361_s20 = scalar_lea.vmem %s678_s0, 16  ;;  %s2368_s22 = scalar_lea.vmem %s678_s0, 32 }
  0xff   : > { %p2362_p5 = scmp.ne.s32.totalorder %s678_s0, %s2361_s20  ;;  %p2369_p4 = scmp.lt.s32.totalorder %s678_s0, %s678_s0 }
 0x100   : > { %p2370_p10 = scmp.lt.s32.totalorder %s2368_s22, %s2361_s20 }
 0x101   : > { %p2364_p7 = pnand %p2362_p5, %p2812_p8 }
 0x102   : > { %p2371_p11 = por %p2370_p10, %p2369_p4 }
 0x103   : > { %p2365_p9 = pneg %p2364_p7 }
 0x105   : > { %p2372_p12 = pnand %p2371_p11, %p2365_p9 }
 0x107   : > { %2375 = shalt.err (!%p2372_p12)
}
 0x108   : > { %2037 = dma.hbm_to_vmem [thread:$0]  (!%p2796_p6), %s3449_s11, 16, %s678_s0, [#allocation16]  }
 0x109   : > { %s3450_s15 = sld [smem:[#allocation48_spill]] }
 0x10f   : > { %s2376_s4 = scalar_lea.hbm %s3450_s15, 256 }
 0x110   : > { %p2377_p13 = scmp.ne.s32.totalorder %s3450_s15, %s2376_s4  ;;  %p2383_p3 = scmp.lt.u32.totalorder %s2376_s4, %s3450_s15 }
 0x112   : > { %p2379_p0 = pnand %p2377_p13, %p2812_p8 }
 0x114   : > { %p2380_p1 = pneg %p2379_p0 }
 0x116   : > { %p2385_p2 = pnand %p2383_p3, %p2380_p1 }
 0x118   : > { %2388 = shalt.err (!%p2385_p2)
}
 0x119   : > { %s2389_s20 = scalar_lea.vmem %s705_s7, 256  ;;  %p2397_p4 = scmp.lt.s32.totalorder %s705_s7, %s705_s7 }
 0x11a   : > { %p2390_p5 = scmp.ne.s32.totalorder %s705_s7, %s2389_s20  ;;  %p2398_p10 = scmp.lt.s32.totalorder %s2389_s20, %s2389_s20 }
 0x11c   : > { %p2392_p7 = pnand %p2390_p5, %p2812_p8  ;;  %p2399_p11 = por %p2398_p10, %p2397_p4 }
 0x11e   : > { %p2393_p9 = pneg %p2392_p7 }
 0x120   : > { %p2400_p12 = pnand %p2399_p11, %p2393_p9 }
 0x122   : > { %2403 = shalt.err (!%p2400_p12)
}
 0x123   : > { %s3451_s0 = smov 4   ;;  %s3452_s22 = smov 64  }
 0x124   : > { %2043 = dma.hbm_to_vmem [thread:$0]  (!%p2796_p6), %s3450_s15, 256, %s705_s7, [#allocation19], %s3452_s22, %s3452_s22, %s3451_s0  }
 0x125   : > { %s3412_s28 = sadd.s32 4294967294, %s2614_s1   ;;  %s2999_s27 = sadd.s32 1, %s2614_s1  }
 0x126   : > { %s58_s16 = sadd.s32 1, %s2610_s5  ;;  %s55_s3 = ssub.s32 %s2614_s1, %s2999_s27 }
 0x127   : > { %p65_p8 = scmp.ne.s32.totalorder %s2610_s5, %s2606_s25  ;;  %p56_p13 = scmp.eq.s32.totalorder %s55_s3, 0 }
 0x128   : > { %p66_p0 = scmp.eq.s32.totalorder %s2614_s1, 0  ;;  %p71_p1 = scmp.ne.s32.totalorder %s2606_s25, %s2602_s24 }
 0x129   : > { %p520_p3 = scmp.eq.s32.totalorder %s2780_s2, 1  ;;  %p3453_p5 = scmp.eq.s32.totalorder %s2780_s2, 0 }
 0x12a   : > { %s3011_s4 = scalar_select %p56_p13, %s2610_s5, %s58_s16  }
 0x12b   : > { %p67_p2 = por %p66_p0, %p65_p8  ;;  %p3015_p7 = por %p3453_p5, %p71_p1 }
 0x12c   : > { %p3019_p6 = por %p520_p3, %p65_p8  ;;  %p526_p9 = scmp.eq.s32.totalorder %s3412_s28, 1 }
 0x12d   : > { %p2070_p4 = scmp.lt.s32.totalorder %s2614_s1, 2  ;;  %s3027_s29 = sand.u32 1, %s2610_s5  }
 0x12e   : > { %s3455_s7 = scalar_select %p3019_p6, 1, 0 }
 0x12f   : > { %p3029_p10 = por %p526_p9, %p71_p1  ;;  %s1826_s21 = sshll.u32 %s3027_s29, 3 }
 0x130   : > { %s1827_s20 = sshll.u32 %s2614_s1, 7  ;;  %s3457_s18 = sld [smem:[#allocation34_spill]] }
 0x131   : > { %s3456_s19 = scalar_select %p3029_p10, 1, 0 }
 0x132   : > { %s737_s16 = scalar_lea.vmem [#allocation3], %s1826_s21  ;;  %p3040_p11 = pnand %p2070_p4, %p67_p2 }
 0x133   : > { %s744_s3 = sshll.u32 %s737_s16, 4  ;;  %s734_s10 = scalar_lea.sflag [#allocation4], %s3027_s29  ;;  %s3044_s3 = int_to_ptr.vmem [resolvable:$true] %s744_s3 }
 0x134   : > { %p2406_p8 = pneg %p3040_p11 }
 0x136   : > { %s3038_s26 = scalar_lea.hbm %s3457_s18, %s1827_s20  ;;  %s2409_s0 = scalar_lea.hbm %s3457_s18, 256 }
 0x137   : > { %s2404_s11 = scalar_lea.hbm %s3038_s26, 128  ;;  %p2410_p1 = scmp.lt.u32.totalorder %s3038_s26, %s3457_s18 }
 0x138   : > { %p2405_p12 = scmp.ne.s32.totalorder %s3038_s26, %s2404_s11  ;;  %p2411_p3 = scmp.lt.u32.totalorder %s2409_s0, %s2404_s11 }
 0x139   : > { %p2413_p5 = scmp.lt.u32.totalorder %s2404_s11, %s3038_s26 }
 0x13a   : > { %p2407_p13 = pnand %p2406_p8, %p2405_p12  ;;  %p2412_p2 = por %p2411_p3, %p2410_p1 }
 0x13c   : > { %p2408_p0 = pneg %p2407_p13  ;;  %p2414_p9 = por %p2413_p5, %p2412_p2 }
 0x13e   : > { %p2415_p4 = pnand %p2414_p9, %p2408_p0 }
 0x140   : > { %2418 = shalt.err (!%p2415_p4)
}
 0x141   : > { %s2419_s9 = scalar_lea.vmem %s3044_s3, 128  ;;  %s2627_s21 = smov [#allocation3]  }
 0x142   : > { %p2420_p12 = scmp.ne.s32.totalorder %s3044_s3, %s2419_s9  ;;  %s2424_s20 = sshll.u32 %s2627_s21, 4  ;;  %s2425_s20 = int_to_ptr.vmem [resolvable:$false] %s2424_s20 }
 0x143   : > { %s2426_s22 = scalar_lea.vmem %s2425_s20, 256  ;;  %p2427_p6 = scmp.lt.s32.totalorder %s3044_s3, %s2425_s20 }
 0x144   : > { %p2422_p13 = pnand %p2420_p12, %p2406_p8  ;;  %p2428_p1 = scmp.lt.s32.totalorder %s2426_s22, %s2419_s9 }
 0x146   : > { %p2423_p10 = pneg %p2422_p13  ;;  %p2429_p3 = por %p2428_p1, %p2427_p6 }
 0x148   : > { %p2430_p2 = pnand %p2429_p3, %p2423_p10 }
 0x14a   : > { %2433 = shalt.err (!%p2430_p2)
}
 0x14b   : > { %2047 = dma.hbm_to_vmem [thread:$0]  (!%p3040_p11), %s3038_s26, 128, %s3044_s3, %s734_s10  }
 0x14c   : > { %s3459_s11 = sshll.u32 %s3027_s29, 4  ;;  %s751_s21 = sand.u32 1, %s2614_s1  }
 0x14d   : > { %s755_s0 = scalar_lea.vmem [#allocation6], %s3459_s11  ;;  %s1887_s20 = sshll.u32 %s2614_s1, 8 }
 0x14e   : > { %s762_s16 = sshll.u32 %s755_s0, 4  ;;  %s3460_s12 = sld [smem:[#allocation35_spill]]  ;;  %s3076_s16 = int_to_ptr.vmem [resolvable:$true] %s762_s16 }
 0x14f   : > { %s3084_s15 = scalar_lea.sflag [#allocation7], %s751_s21 }
 0x154   : > { %s3082_s13 = scalar_lea.hbm %s3460_s12, %s1887_s20  ;;  %s2439_s26 = scalar_lea.hbm %s3460_s12, 512 }
 0x155   : > { %s2434_s18 = scalar_lea.hbm %s3082_s13, 256  ;;  %p2440_p5 = scmp.lt.u32.totalorder %s3082_s13, %s3460_s12 }
 0x156   : > { %p2435_p6 = scmp.ne.s32.totalorder %s3082_s13, %s2434_s18  ;;  %p2441_p9 = scmp.lt.u32.totalorder %s2439_s26, %s2434_s18 }
 0x157   : > { %p2443_p12 = scmp.lt.u32.totalorder %s2434_s18, %s3082_s13 }
 0x158   : > { %p2437_p10 = pnand %p2435_p6, %p2406_p8  ;;  %p2442_p4 = por %p2441_p9, %p2440_p5 }
 0x15a   : > { %p2438_p0 = pneg %p2437_p10  ;;  %p2444_p13 = por %p2443_p12, %p2442_p4 }
 0x15c   : > { %p2445_p1 = pnand %p2444_p13, %p2438_p0 }
 0x15e   : > { %2448 = shalt.err (!%p2445_p1)
}
 0x15f   : > { %s2449_s0 = scalar_lea.vmem %s3076_s16, 256  ;;  %s2628_s21 = smov [#allocation6]  }
 0x160   : > { %p2450_p3 = scmp.ne.s32.totalorder %s3076_s16, %s2449_s0  ;;  %s2454_s20 = sshll.u32 %s2628_s21, 4  ;;  %s2455_s20 = int_to_ptr.vmem [resolvable:$false] %s2454_s20 }
 0x161   : > { %s2456_s9 = scalar_lea.vmem %s2455_s20, 512  ;;  %p2457_p10 = scmp.lt.s32.totalorder %s3076_s16, %s2455_s20 }
 0x162   : > { %p2452_p2 = pnand %p2450_p3, %p2406_p8  ;;  %p2458_p5 = scmp.lt.s32.totalorder %s2456_s9, %s2449_s0 }
 0x164   : > { %p2453_p6 = pneg %p2452_p2  ;;  %p2459_p9 = por %p2458_p5, %p2457_p10 }
 0x166   : > { %p2460_p4 = pnand %p2459_p9, %p2453_p6 }
 0x168   : > { %2463 = shalt.err (!%p2460_p4)
}
 0x169   : > { %s2629_s18 = smov 128   ;;  %s2630_s22 = smov 8  }
 0x16a   : > { %2050 = dma.hbm_to_vmem [thread:$0]  (!%p3040_p11), %s3082_s13, 256, %s3076_s16, %s3084_s15, %s2629_s18, %s2629_s18, %s2630_s22  }
 0x16b   : > { %p3461_p8 = scmp.ne.s32.totalorder %s3439_s6, 0 }
 0x16c   : > { %s3113_s10 = sand.u32 (!%p3461_p8), 1, %s2606_s25  }
 0x16d   : > { %774 = sbr.rel (%p3461_p8) target bundleno = 2627 (0xa43), region = 104  ;;  %s3116_s29 = sshll.u32 (!%p3461_p8), %s3113_s10, 3 }
 0x16e   : > { %s777_s26 = scalar_lea.sflag (!%p3461_p8), [#allocation4], %s3113_s10  ;;  %s780_s3 = scalar_lea.vmem (!%p3461_p8), [#allocation3], %s3116_s29 }
 0x174   : > { %2565 = dma.done.wait (%p3015_p7), %s777_s26, 128  }
 0x175   : > { %2567 = vsyncadd (%p3015_p7), %s777_s26, 4294967168  ;;  %s785_s15 = sand.u32 1, %s2780_s2   ;;  %s1833_s6 = sshll.u32 %s3113_s10, 4 }
 0x176   : > { %s786_s13 = scalar_lea.sflag [#allocation7], %s785_s15  ;;  %s789_s28 = scalar_lea.vmem [#allocation6], %s1833_s6 }
 0x177   : > { %2569 = dma.done.wait (%p3015_p7), %s786_s13, 256  }
 0x178   : > { %2571 = vsyncadd (%p3015_p7), %s786_s13, 4294967040  ;;  %p3462_p11 = scmp.eq.s32.totalorder %s2780_s2, 0 }
 0x17a   : > { %2573 = dma.done.wait (%p3462_p11), [#allocation7], 256   ;;  %p3463_p0 = pmov %p3462_p11 }
 0x17c   : > { %2575 = vsyncadd (%p3463_p0), [#allocation7], 4294967040  ;;  %p3464_p12 = pmov %p3463_p0 }
 0x17d   : > { %p3465_p13 = pmov %p3463_p0 }
 0x17e   : > { %2577 = dma.done.wait (%p3464_p12), [#allocation10], 272  }
 0x17f   : > { %2579 = vsyncadd (%p3465_p13), [#allocation10], 4294967024  ;;  %p3466_p1 = pmov %p3463_p0 }
 0x180   : > { %p3467_p3 = pmov %p3463_p0 }
 0x181   : > { %2581 = dma.done.wait (%p3466_p1), [#allocation13], 32  }
 0x182   : > { %2583 = vsyncadd (%p3467_p3), [#allocation13], 4294967264  ;;  %p3468_p7 = pmov %p3463_p0 }
 0x183   : > { %p3469_p2 = pmov %p3463_p0 }
 0x184   : > { %2585 = dma.done.wait (%p3468_p7), [#allocation16], 32  }
 0x185   : > { %2587 = vsyncadd (%p3469_p2), [#allocation16], 4294967264  ;;  %p3470_p6 = pmov %p3463_p0 }
 0x186   : > { %p3471_p10 = pmov %p3463_p0 }
 0x187   : > { %2589 = dma.done.wait (%p3470_p6), [#allocation19], 272  }
 0x188   : > { %2591 = vsyncadd (%p3471_p10), [#allocation19], 4294967024  ;;  %v2631_v0 = vmov 0.0   ;;  %vm2632_vm0 = vmmov 0   ;;  %v2128_v1 = vld [vmem:[#allocation9] sm:$0xff]   ;;  %v2129_v2 = vld [vmem:[#allocation9 + $0x8] sm:$0xff]  }
 0x189   : > { %1918 = vmatprep.subr.bf16.mxu1 %v2631_v0  ;;  %1922 = vmatprep.mubr.msk.bf16.mxu1 %vm2632_vm0, %v2631_v0  ;;  %v906_v3 = vld [vmem:[%s789_s28] sm:$0xff]  ;;  %v907_v4 = vld [vmem:[%s789_s28 + $0x8] sm:$0xff]  ;;  %vm933_vm1 = vcmask 261120   ;;  %s3472_s11 = sld [smem:[#allocation39_spill]]  ;;  %s3473_s20 = sld [smem:[#allocation38_spill]]  ;;  %vm1157_vm2 = vcmask 130048  }
 0x18a   : > { %1910 = vmatprep.subr.bf16.mxu0 %v2631_v0  ;;  %1914 = vmatprep.mubr.msk.bf16.mxu0 %vm2632_vm0, %v2631_v0  ;;  %v2130_v5 = vld [vmem:[#allocation8] sm:$0xff]   ;;  %v2131_v6 = vld [vmem:[#allocation8 + $0x8] sm:$0xff]   ;;  %v909_v7 = vpack.c.bf16 %v907_v4, %v906_v3  ;;  %v3161_v8 = vld [vmem:[%s780_s3] sm:$0xff]  ;;  %s3474_s8 = sld [smem:[#allocation42_spill]]  ;;  %s1845_s3 = sshll.u32 %s3113_s10, 2  ;;  %vm1170_vm3 = vcmask 125952  }
 0x18b   : > { %1919 = vmatpush3.bf16.msra.mxu1 %v2128_v1  ;;  %1911 = vmatpush3.bf16.msra.mxu0 %v2130_v5  ;;  %v908_v9 = vpack.c.bf16 %v3161_v8, %v3161_v8  ;;  %v1850_v10 = vld [vmem:[#allocation11] ss:$0 sm:$0xff]  ;;  %v1854_v40 = vld [vmem:[#allocation12] ss:$0 sm:$0xff]  ;;  %s3202_s6 = scalar_lea.vmem [#allocation24], %s1845_s3  ;;  %v1283_v52 = vsel %vm933_vm1, %v3161_v8, 0.0 }
 0x18c   : > { %1920 = vmatprep.subr.bf16.mxu1 %v2631_v0  ;;  %1912 = vmatprep.subr.bf16.mxu0 %v2631_v0  ;;  %v1860_v58 = vld [vmem:[#allocation14] ss:$0 sm:$0xff]  ;;  %s895_s17 = scalar_lea.vmem [#allocation22], %s3116_s29  ;;  %s3475_s22 = sld [smem:[#allocation47_spill]]  ;;  %vm1477_vm4 = vcmask 523264  }
 0x18d   : > { %1284 = vadd.xlane.f32.xlu1 %v1283_v52  ;;  %s3476_s13 = sld [smem:[#allocation49_spill]]  ;;  %s1481_s0 = sld [smem:[#allocation2]] }
 0x18e   : > { %s3416_s21 = sshll.u32 %s2780_s2, 7  ;;  %s1562_s3 = sshll.u32 %s895_s17, 4  ;;  %s1563_s3 = int_to_ptr.vmem [resolvable:$true] %s1562_s3 }
 0x18f   : > { %1921 = vmatpush3.bf16.msra.mxu1 %v2129_v2  ;;  %1913 = vmatpush3.bf16.msra.mxu0 %v2131_v6  ;;  %v1846_v18 = vld [vmem:[%s3472_s11] ss:$0 sm:$0xff]  ;;  %v2133_v27 = vld [vmem:[%s3473_s20 + $0x8] sm:$0xff]   ;;  %s3477_s11 = sld [smem:[#allocation50_spill]]  ;;  %s2464_s28 = scalar_lea.vmem %s1563_s3, 128 }
 0x190   : > { %1934 = vmatprep.subr.bf16.mxu1 %v2631_v0  ;;  %1926 = vmatprep.subr.bf16.mxu0 %v2631_v0  ;;  %v2132_v26 = vld [vmem:[%s3473_s20] sm:$0xff]   ;;  %v2135_v51 = vld [vmem:[%s3474_s8 + $0x8] sm:$0xff]   ;;  %p2465_p5 = scmp.ne.s32.totalorder %s1563_s3, %s2464_s28  ;;  %p3479_p9 = scmp.ne.s32.totalorder %s3455_s7, 0 }
 0x191   : > { %v2134_v46 = vld [vmem:[%s3474_s8] sm:$0xff]   ;;  %s2633_s16 = smov [#allocation22]  }
 0x192   : > { %1923 = vmatmul.mubr.msk.bf16.vlgmr.msra.gmra.mrb[0].mxu1 %vm933_vm1, %v909_v7  ;;  %1915 = vmatmul.mubr.msk.bf16.vlgmr.msra.gmra.mrb[0].mxu0 %vm933_vm1, %v908_v9  ;;  %p2466_p4 = pnand %p2465_p5, %p3479_p9 }
 0x193   : > { %1936 = vmatprep.mubr.msk.bf16.mxu1 %vm2632_vm0, %v2631_v0  ;;  %1930 = vmatprep.mubr.msk.bf16.mxu0 %vm2632_vm0, %v2631_v0 }
 0x194   : > { %1927 = vmatpush3.bf16.msra.mxu0 %v2132_v26  ;;  %p2467_p8 = pneg %p2466_p4 }
 0x195   : > { %1928 = vmatprep.subr.bf16.mxu0 %v2631_v0 }
 0x198   : > { %1929 = vmatpush3.bf16.msra.mxu0 %v2133_v27  ;;  %v1867_v27 = vld [vmem:[%s3475_s22] ss:$0 sm:$0xff]  ;;  %s3478_s22 = sld [smem:[#allocation54_spill]] }
 0x199   : > { %1940 = vmatprep.subr.bf16.mxu0 %v2631_v0 }
 0x19b   : > { %1931 = vmatmul.mubr.msk.bf16.vlgmr.msra.gmra.mrb[4].mxu0 %vm933_vm1, %v909_v7 }
 0x19c   : > { %1942 = vmatprep.mubr.msk.bf16.mxu0 %vm2632_vm0, %v2631_v0 }
 0x19e   : > { %s3262_s26 = scalar_lea.hbm %s3478_s22, %s3416_s21 }
 0x21a   : > { %v1285_v2 = vpop.xlane.xlu1 %1284 }
 0x265   : > { %v1037_v11 = vpop.f32.mrb[0].mxu1  ;;  %v971_v17 = vpop.f32.mrb[0].mxu0 }
 0x266   : > { %v1924_v12 = vpop.f32.mrb[1].mxu1  ;;  %v1038_v14 = vadd.f32 %v1850_v10, %v1037_v11  ;;  %v1916_v19 = vpop.f32.mrb[1].mxu0  ;;  %v972_v23 = vadd.f32 %v1846_v18, %v971_v17 }
 0x267   : > { %v1040_v13 = vpop.f32.mrb[2].mxu1  ;;  %v974_v21 = vpop.f32.mrb[2].mxu0 }
 0x268   : > { %v1041_v15 = vadd.f32 %v1850_v10, %v1040_v13  ;;  %v1925_v16 = vpop.f32.mrb[3].mxu1  ;;  %v1917_v22 = vpop.f32.mrb[3].mxu0  ;;  %v1108_v25 = vpack.c.bf16 %v972_v23, %v972_v23  ;;  %v2136_v13 = vld [vmem:[#allocation20] sm:$0xff]   ;;  %v1866_v23 = vld [vmem:[#allocation17] ss:$0 sm:$0xff] }
 0x269   : > { %v2139_v16 = vld [vmem:[%s3387_s14 + $0x8] sm:$0xff]  }
 0x26a   : > { %v1109_v20 = vpack.c.bf16 %v1041_v15, %v1038_v14  ;;  %v2137_v14 = vld [vmem:[%s3387_s14] sm:$0xff]  }
 0x26b   : > { %v2138_v15 = vld [vmem:[#allocation20 + $0x8] sm:$0xff]  }
 0x26c   : > { %v1115_v24 = vsel %vm933_vm1, %v1109_v20, 0 }
 0x26d   : > { %1935 = vmatpush3.bf16.xpose.msra.mxu1 %v1115_v24  ;;  %v1864_v24 = vld [vmem:[#allocation15] ss:$0 sm:$0xff] }
 0x26e   : > { %1946 = vmatprep.subr.bf16.mxu1 %v2631_v0  ;;  %v1101_v33 = vpop.f32.mrb[4].mxu0 }
 0x26f   : > { %v1932_v34 = vpop.f32.mrb[5].mxu0  ;;  %v1102_v41 = vadd.f32 %v1854_v40, %v1101_v33 }
 0x270   : > { %v1104_v42 = vpop.f32.mrb[6].mxu0 }
 0x271   : > { %v1933_v43 = vpop.f32.mrb[7].mxu0  ;;  %v1105_v44 = vadd.f32 %v1854_v40, %v1104_v42 }
 0x273   : > { %v1110_v45 = vpack.c.bf16 %v1105_v44, %v1102_v41 }
 0x274   : > { %1937 = vmatmul.mubr.msk.bf16.vlgmr.msra.gmra.mrb[4].mxu1 %vm933_vm1, %v1108_v25 }
 0x275   : > { %1950 = vmatprep.mubr.msk.bf16.mxu1 %vm2632_vm0, %v2631_v0  ;;  %1941 = vmatpush3.bf16.msra.mxu0 %v1110_v45  ;;  %v1875_v45 = vld [vmem:[%s3477_s11] ss:$0 sm:$0xff]  ;;  %s2468_s11 = sshll.u32 %s2633_s16, 4  ;;  %s2469_s11 = int_to_ptr.vmem [resolvable:$false] %s2468_s11 }
 0x276   : > { %1954 = vmatprep.subr.bf16.mxu0 %v2631_v0  ;;  %1947 = vmatpush3.bf16.msra.mxu1 %v2134_v46  ;;  %p2471_p11 = scmp.lt.s32.totalorder %s1563_s3, %s2469_s11 }
 0x277   : > { %1948 = vmatprep.subr.bf16.mxu1 %v2631_v0 }
 0x27a   : > { %1949 = vmatpush3.bf16.msra.mxu1 %v2135_v51 }
 0x27b   : > { %1962 = vmatprep.subr.bf16.mxu1 %v2631_v0 }
 0x347   : > { %v1151_v28 = vpop.f32.mrb[4].mxu1 }
 0x348   : > { %v1938_v29 = vpop.f32.mrb[5].mxu1  ;;  %v1158_v30 = vsel %vm1157_vm2, %v1151_v28, -inf }
 0x349   : > { %1159 = vmax.xlane.f32.xlu0 %v1158_v30  ;;  %v1154_v31 = vpop.f32.mrb[6].mxu1 }
 0x34a   : > { %v1939_v32 = vpop.f32.mrb[7].mxu1 }
 0x3d6   : > { %v1160_v35 = vpop.xlane.xlu0 %1159 }
 0x3d7   : > { %v1161_v36 = vsub.f32 %v1151_v28, %v1160_v35  ;;  %v1865_v28 = vld [vmem:[#allocation18] ss:$0 sm:$0xff] }
 0x3d9   : > { %v1162_v37 = vmul.f32 1.442695, %v1161_v36  ;;  %v1874_v36 = vld [vmem:[%s3476_s13] ss:$0 sm:$0xff]  ;;  %s3268_s13 = scalar_lea.sflag [#allocation23], %s785_s15 }
 0x3db   : > { %2140 = vpow2.f32 %v1162_v37 }
 0x3e5   : > { %v2141_v38 = vpop.eup %2140 }
 0x3e6   : > { %v1164_v39 = vsel %vm1157_vm2, %v2141_v38, 0.0 }
 0x3e7   : > { %1165 = vadd.xlane.f32.xlu0 %v1164_v39 }
 0x474   : > { %v1166_v47 = vpop.xlane.xlu0 %1165 }
 0x475   : > { %2142 = vrcp.f32 %v1166_v47 }
 0x47f   : > { %v2143_v48 = vpop.eup %2142 }
 0x480   : > { %v1168_v49 = vmul.f32 %v2143_v48, %v2141_v38 }
 0x482   : > { %v1169_v50 = vpack.c.bf16 %v1168_v49, %v1168_v49  ;;  %v1482_v49 = vstv %s1481_s0  ;;  %s2470_s0 = scalar_lea.vmem %s2469_s11, 256 }
 0x483   : > { %p2472_p0 = scmp.lt.s32.totalorder %s2470_s0, %s2464_s28 }
 0x484   : > { %1943 = vmatmul.mubr.msk.bf16.vlgmr.msra.gmra.mrb[8].mxu0 %vm1157_vm2, %v1169_v50  ;;  %1171 = vst.msk [vmem:[%s3202_s6] sm:$0xf] %vm1170_vm3, %v1169_v50 }
 0x485   : > { %1958 = vmatprep.mubr.msk.bf16.mxu0 %vm2632_vm0, %v2631_v0  ;;  %1955 = vmatpush3.bf16.msra.mxu0 %v2136_v13  ;;  %p2473_p12 = por %p2472_p0, %p2471_p11 }
 0x486   : > { %1956 = vmatprep.subr.bf16.mxu0 %v2631_v0 }
 0x487   : > { %p2474_p13 = pnand %p2473_p12, %p2467_p8 }
 0x489   : > { %1957 = vmatpush3.bf16.msra.mxu0 %v2138_v15 }
 0x557   : > { %v1209_v53 = vpop.f32.mrb[8].mxu0 }
 0x558   : > { %v1215_v54 = vpack.c.bf16 %v1209_v53, %v1209_v53  ;;  %v1944_v55 = vpop.f32.mrb[9].mxu0 }
 0x559   : > { %v1212_v56 = vpop.f32.mrb[10].mxu0 }
 0x55a   : > { %v1945_v57 = vpop.f32.mrb[11].mxu0  ;;  %1951 = vmatmul.mubr.msk.bf16.vlgmr.msra.gmra.mrb[8].mxu1 %vm933_vm1, %v1215_v54 }
 0x55b   : > { %1966 = vmatprep.mubr.msk.bf16.mxu1 %vm2632_vm0, %v2631_v0  ;;  %1963 = vmatpush3.bf16.msra.mxu1 %v2137_v14 }
 0x55c   : > { %1964 = vmatprep.subr.bf16.mxu1 %v2631_v0 }
 0x55f   : > { %1965 = vmatpush3.bf16.msra.mxu1 %v2139_v16 }
 0x62d   : > { %v1276_v59 = vpop.f32.mrb[8].mxu1 }
 0x62e   : > { %v3216_v60 = vadd.f32 %v1860_v58, %v1276_v59  ;;  %v1952_v61 = vpop.f32.mrb[9].mxu1 }
 0x62f   : > { %v1279_v62 = vpop.f32.mrb[10].mxu1 }
 0x630   : > { %v1953_v63 = vpop.f32.mrb[11].mxu1  ;;  %v1286_v1 = vsel %vm933_vm1, %v3216_v60, 0.0  ;;  %1282 = vst.msk [vmem:[%s895_s17] sm:$0xff] %vm933_vm1, %v3216_v60 }
 0x631   : > { %1287 = vadd.xlane.f32.xlu1 %v1286_v1 }
 0x6be   : > { %v1288_v3 = vpop.xlane.xlu1 %1287 }
 0x6bf   : > { %v1289_v4 = vadd.f32 %v1288_v3, %v1285_v2 }
 0x6c1   : > { %v1291_v5 = vmul.f32 0.015625, %v1289_v4 }
 0x6c3   : > { %v1292_v6 = vsub.f32 %v3161_v8, %v1291_v5  ;;  %v1297_v7 = vsub.f32 %v3216_v60, %v1291_v5 }
 0x6c5   : > { %v1298_v9 = vmul.f32 %v1297_v7, %v1297_v7  ;;  %v1293_v10 = vmul.f32 %v1292_v6, %v1292_v6 }
 0x6c7   : > { %v1299_v11 = vsel %vm933_vm1, %v1298_v9, 0.0  ;;  %v1294_v12 = vsel %vm933_vm1, %v1293_v10, 0.0 }
 0x6c8   : > { %1300 = vadd.xlane.f32.xlu1 %v1299_v11  ;;  %1295 = vadd.xlane.f32.xlu0 %v1294_v12 }
 0x755   : > { %v1301_v17 = vpop.xlane.xlu1 %1300  ;;  %v1296_v18 = vpop.xlane.xlu0 %1295 }
 0x756   : > { %v1302_v19 = vadd.f32 %v1301_v17, %v1296_v18 }
 0x758   : > { %v1303_v20 = vmul.f32 0.015625, %v1302_v19 }
 0x75a   : > { %v1304_v21 = vadd.f32 1e-05, %v1303_v20 }
 0x75c   : > { %2144 = vrsqrt.f32 %v1304_v21 }
 0x766   : > { %v2145_v22 = vpop.eup %2144 }
 0x767   : > { %v1306_v25 = vmul.f32 %v2145_v22, %v1292_v6  ;;  %v1323_v26 = vmul.f32 %v2145_v22, %v1297_v7 }
 0x769   : > { %v1331_v29 = vmul.f32 %v1866_v23, %v1323_v26  ;;  %v1314_v0 = vmul.f32 %v1864_v24, %v1306_v25 }
 0x76b   : > { %v1339_v30 = vadd.f32 %v1867_v27, %v1331_v29  ;;  %v1322_v31 = vadd.f32 %v1865_v28, %v1314_v0 }
 0x76d   : > { %v1345_v32 = vpack.c.bf16 %v1339_v30, %v1339_v30  ;;  %v1340_v33 = vpack.c.bf16 %v1322_v31, %v1322_v31 }
 0x76f   : > { %1959 = vmatmul.mubr.msk.bf16.vlgmr.msra.gmra.mrb[12].mxu0 %vm933_vm1, %v1345_v32  ;;  %1967 = vmatmul.mubr.msk.bf16.vlgmr.msra.gmra.mrb[12].mxu1 %vm933_vm1, %v1340_v33 }
 0x842   : > { %v1399_v34 = vpop.f32.mrb[12].mxu0  ;;  %v1454_v35 = vpop.f32.mrb[12].mxu1 }
 0x843   : > { %v1455_v37 = vadd.f32 %v1454_v35, %v1399_v34  ;;  %v1960_v38 = vpop.f32.mrb[13].mxu0  ;;  %v1968_v39 = vpop.f32.mrb[13].mxu1 }
 0x844   : > { %v1402_v40 = vpop.f32.mrb[14].mxu0  ;;  %v1457_v41 = vpop.f32.mrb[14].mxu1 }
 0x845   : > { %v1467_v42 = vadd.f32 %v1874_v36, %v1455_v37  ;;  %v1961_v43 = vpop.f32.mrb[15].mxu0  ;;  %v1969_v44 = vpop.f32.mrb[15].mxu1 }
 0x847   : > { %v1468_v46 = vmax.f32 %v1467_v42, 0.0 }
 0x849   : > { %v1476_v47 = vmul.f32 %v1875_v45, %v1468_v46 }
 0x84b   : > { %v1478_v48 = vsel %vm1477_vm4, %v1476_v47, 0.0 }
 0x84c   : > { %1479 = vadd.xlane.f32.xlu0 %v1478_v48 }
 0x8d9   : > { %v1480_v50 = vpop.xlane.xlu0 %1479 }
 0x8da   : > { %v1483_v51 = vadd.f32 %v1482_v49, %v1480_v50 }
 0x8dc   : > { %v1876_v52 = vmul.f32 -1.442695, %v1483_v51 }
 0x8de   : > { %2146 = vpow2.f32 %v1876_v52 }
 0x8e8   : > { %v2147_v53 = vpop.eup %2146 }
 0x8e9   : > { %v1487_v54 = vadd.f32 1.0, %v2147_v53 }
 0x8eb   : > { %2148 = vrcp.f32 %v1487_v54 }
 0x8f5   : > { %v2149_v55 = vpop.eup %2148 }
 0x8f6   : > { %v1490_v56 = vsub.f32 1.0, %v2149_v55  ;;  %v1492_v58 = vmul.f32 %v2149_v55, %v3216_v60 }
 0x8f8   : > { %v1491_v57 = vmul.f32 %v1490_v56, %v3161_v8 }
 0x8fa   : > { %v1493_v59 = vadd.f32 %v1492_v58, %v1491_v57 }
 0x8fc   : > { %v1494_v61 = vsel %vm933_vm1, %v1493_v59, 0.0 }
 0x8fd   : > { %1495 = vadd.xlane.f32.xlu1 %v1494_v61 }
 0x98a   : > { %v1496_v62 = vpop.xlane.xlu1 %1495 }
 0x98b   : > { %v1498_v63 = vmul.f32 0.03125, %v1496_v62 }
 0x98d   : > { %v3251_v1 = vsub.f32 %v1493_v59, %v1498_v63 }
 0x98f   : > { %v1500_v2 = vmul.f32 %v3251_v1, %v3251_v1 }
 0x991   : > { %v1501_v3 = vsel %vm933_vm1, %v1500_v2, 0.0 }
 0x992   : > { %1502 = vadd.xlane.f32.xlu0 %v1501_v3 }
 0x993   : > { %2477 = shalt.err (!%p2474_p13)
}
 0x994   : > { %s2478_s15 = scalar_lea.hbm %s3262_s26, 128  ;;  %s2482_s18 = scalar_lea.hbm %s3478_s22, 256 }
 0x995   : > { %p2479_p1 = scmp.ne.s32.totalorder %s3262_s26, %s2478_s15  ;;  %p2483_p2 = scmp.lt.u32.totalorder %s3262_s26, %s3478_s22 }
 0x996   : > { %p2484_p6 = scmp.lt.u32.totalorder %s2482_s18, %s2478_s15  ;;  %p2486_p5 = scmp.lt.u32.totalorder %s2478_s15, %s3262_s26 }
 0x997   : > { %p2480_p3 = pnand %p2479_p1, %p3479_p9 }
 0x998   : > { %p2485_p10 = por %p2484_p6, %p2483_p2 }
 0x999   : > { %p2481_p7 = pneg %p2480_p3 }
 0x99a   : > { %p2487_p4 = por %p2486_p5, %p2485_p10 }
 0x99c   : > { %p2488_p8 = pnand %p2487_p4, %p2481_p7 }
 0x99e   : > { %2491 = shalt.err (!%p2488_p8)
}
 0x99f   : > { %2011 = dma.vmem_to_hbm [thread:$0]  (%p3479_p9), %s1563_s3, 128, %s3262_s26, %s3268_s13  }
 0x9a0   : > { %s1884_s28 = sshll.u32 %s2780_s2, 6  ;;  %s3480_s9 = sld [smem:[#allocation55_spill]] }
 0x9a1   : > { %s1575_s18 = sshll.u32 %s3202_s6, 4  ;;  %s2634_s11 = smov [#allocation24]   ;;  %s1576_s18 = int_to_ptr.vmem [resolvable:$true] %s1575_s18 }
 0x9a2   : > { %s2492_s15 = scalar_lea.vmem %s1576_s18, 64  ;;  %s2496_s21 = sshll.u32 %s2634_s11, 4  ;;  %s2497_s21 = int_to_ptr.vmem [resolvable:$false] %s2496_s21 }
 0x9a3   : > { %p2493_p11 = scmp.ne.s32.totalorder %s1576_s18, %s2492_s15  ;;  %s2498_s8 = scalar_lea.vmem %s2497_s21, 128 }
 0x9a4   : > { %p2499_p13 = scmp.lt.s32.totalorder %s1576_s18, %s2497_s21  ;;  %p2500_p1 = scmp.lt.s32.totalorder %s2498_s8, %s2492_s15 }
 0x9a5   : > { %p2494_p0 = pnand %p2493_p11, %p3479_p9 }
 0x9a6   : > { %s3292_s16 = scalar_lea.hbm %s3480_s9, %s1884_s28  ;;  %p2501_p3 = por %p2500_p1, %p2499_p13 }
 0x9a7   : > { %p2495_p12 = pneg %p2494_p0 }
 0x9a9   : > { %p2502_p7 = pnand %p2501_p3, %p2495_p12 }
 0x9ab   : > { %2505 = shalt.err (!%p2502_p7)
}
 0x9ac   : > { %s2506_s6 = scalar_lea.hbm %s3292_s16, 64  ;;  %s2510_s28 = scalar_lea.hbm %s3480_s9, 128 }
 0x9ad   : > { %p2507_p2 = scmp.ne.s32.totalorder %s3292_s16, %s2506_s6  ;;  %p2511_p5 = scmp.lt.u32.totalorder %s3292_s16, %s3480_s9 }
 0x9ae   : > { %p2512_p4 = scmp.lt.u32.totalorder %s2510_s28, %s2506_s6  ;;  %p2514_p11 = scmp.lt.u32.totalorder %s2506_s6, %s3292_s16 }
 0x9af   : > { %p2508_p6 = pnand %p2507_p2, %p3479_p9 }
 0x9b0   : > { %p2513_p8 = por %p2512_p4, %p2511_p5 }
 0x9b1   : > { %p2509_p10 = pneg %p2508_p6 }
 0x9b2   : > { %p2515_p0 = por %p2514_p11, %p2513_p8 }
 0x9b4   : > { %p2516_p12 = pnand %p2515_p0, %p2509_p10 }
 0x9b6   : > { %2519 = shalt.err (!%p2516_p12)
}
 0x9b7   : > { %2012 = dma.vmem_to_hbm [thread:$0]  (%p3479_p9), %s1576_s18, 64, %s3292_s16, %s3268_s13  }
 0x9b8   : > { %s3481_s15 = sld [smem:[#allocation51_spill]]  ;;  %s3482_s26 = sld [smem:[#allocation52_spill]] }
 0x9b9   : > { %s888_s3 = scalar_lea.vmem [#allocation21], %s3116_s29  ;;  %s3483_s13 = sshll.u32 %s2780_s2, 7 }
 0x9ba   : > { %s1549_s28 = sshll.u32 %s888_s3, 4  ;;  %s3484_s0 = sld [smem:[#allocation53_spill]]  ;;  %s3328_s28 = int_to_ptr.vmem [resolvable:$true] %s1549_s28 }
 0x9bb   : > { %s1526_s8 = scalar_lea.sflag [#allocation5], %s3113_s10  ;;  %s2520_s17 = scalar_lea.vmem %s3328_s28, 128 }
 0x9bc   : > { %p2521_p13 = scmp.ne.s32.totalorder %s3328_s28, %s2520_s17  ;;  %s2635_s29 = smov [#allocation21]  }
 0x9bd   : > { %s2524_s2 = sshll.u32 %s2635_s29, 4  ;;  %s2525_s2 = int_to_ptr.vmem [resolvable:$false] %s2524_s2 }
 0x9be   : > { %v1877_v6 = vld [vmem:[%s3481_s15] ss:$0 sm:$0xff]  ;;  %p2522_p1 = pnand %p2521_p13, %p3479_p9  ;;  %s2526_s15 = scalar_lea.vmem %s2525_s2, 256 }
 0x9bf   : > { %v1878_v9 = vld [vmem:[%s3482_s26] ss:$0 sm:$0xff]  ;;  %p2527_p7 = scmp.lt.s32.totalorder %s3328_s28, %s2525_s2  ;;  %p2528_p2 = scmp.lt.s32.totalorder %s2526_s15, %s2520_s17 }
 0x9c0   : > { %s3326_s21 = scalar_lea.hbm %s3484_s0, %s3483_s13  ;;  %p2523_p3 = pneg %p2522_p1 }
 0x9c1   : > { %p2529_p6 = por %p2528_p2, %p2527_p7 }
 0x9c3   : > { %p2530_p10 = pnand %p2529_p6, %p2523_p3 }
 0xa1f   : > { %v1503_v8 = vpop.xlane.xlu0 %1502 }
 0xa20   : > { %v1504_v60 = vmul.f32 0.03125, %v1503_v8 }
 0xa22   : > { %v1505_v4 = vadd.f32 1e-05, %v1504_v60 }
 0xa24   : > { %2150 = vrsqrt.f32 %v1505_v4 }
 0xa2e   : > { %v2151_v5 = vpop.eup %2150 }
 0xa2f   : > { %v1507_v7 = vmul.f32 %v2151_v5, %v3251_v1 }
 0xa31   : > { %v1515_v10 = vmul.f32 %v1877_v6, %v1507_v7 }
 0xa33   : > { %v1523_v11 = vadd.f32 %v1878_v9, %v1515_v10 }
 0xa35   : > { %1524 = vst.msk [vmem:[%s888_s3] sm:$0xff] %vm933_vm1, %v1523_v11 }
 0xa36   : > { %2533 = shalt.err (!%p2530_p10)
}
 0xa37   : > { %s2534_s10 = scalar_lea.hbm %s3326_s21, 128  ;;  %s2538_s26 = scalar_lea.hbm %s3484_s0, 256 }
 0xa38   : > { %p2535_p5 = scmp.ne.s32.totalorder %s3326_s21, %s2534_s10  ;;  %p2539_p11 = scmp.lt.u32.totalorder %s3326_s21, %s3484_s0 }
 0xa39   : > { %p2540_p0 = scmp.lt.u32.totalorder %s2538_s26, %s2534_s10  ;;  %p2542_p13 = scmp.lt.u32.totalorder %s2534_s10, %s3326_s21 }
 0xa3a   : > { %p2536_p4 = pnand %p2535_p5, %p3479_p9 }
 0xa3b   : > { %p2541_p12 = por %p2540_p0, %p2539_p11 }
 0xa3c   : > { %p2537_p8 = pneg %p2536_p4 }
 0xa3d   : > { %p2543_p1 = por %p2542_p13, %p2541_p12 }
 0xa3f   : > { %p2544_p3 = pnand %p2543_p1, %p2537_p8 }
 0xa41   : > { %2547 = shalt.err (!%p2544_p3)
}
 0xa42   : > { %2010 = dma.vmem_to_hbm [thread:$0]  (%p3479_p9), %s3328_s28, 128, %s3326_s21, %s1526_s8  }
 0xa43 PF: > { %s1587_s16 = sand.u32 1, %s2602_s24   ;;  %p3485_p7 = scmp.ne.s32.totalorder %s3456_s19, 0 }
 0xa44   : > { %p3486_p2 = scmp.ge.s32.totalorder %s2614_s1, 2  ;;  %s1588_s18 = scalar_lea.sflag [#allocation5], %s1587_s16 }
 0xa46   : > { %p2052_p6 = pnand %p3486_p2, %p3485_p7 }
 0xa48   : > { %2593 = dma.done.wait (!%p2052_p6), %s1588_s18, 128  }
 0xa49   : > { %2595 = vsyncadd (!%p2052_p6), %s1588_s18, 4294967168  ;;  %s3487_s17 = sadd.s32 4294967294, %s2614_s1  }
 0xa4a   : > { %s1596_s29 = sand.u32 1, %s3487_s17  }
 0xa4b   : > { %s1597_s2 = scalar_lea.sflag [#allocation23], %s1596_s29 }
 0xa4c   : > { %2597 = dma.done.wait (!%p2052_p6), %s1597_s2, 192  }
 0xa4d   : > { %2599 = vsyncadd (!%p2052_p6), %s1597_s2, 4294967104  ;;  %p48_p9 = scmp.ge.s32.totalorder %s2999_s27, 4   ;;  %s3488_s24 = smov %s2606_s25 }
 0xa4e   : > { %s3489_s25 = smov %s2610_s5  ;;  %s3490_s5 = smov %s3011_s4 }
 0xa4f   : > { %s3491_s1 = smov %s2999_s27  ;;  %50 = sbr.rel (!%p48_p9) target bundleno = 37 (0x25), region = 230 }
 0xa56   :  { %1611 = vsyncpa [#allocation4], 1 }
 0xa57   :  { %1613 = vsyncpa [#allocation4 + $0x1], 1 }
 0xa58   :  { %1614 = vsyncpa [#allocation7], 1 }
 0xa59   :  { %1616 = vsyncpa [#allocation7 + $0x1], 1 }
 0xa5a   :  { %1617 = vsyncpa [#allocation10], 1 }
 0xa5b   :  { %1618 = vsyncpa [#allocation13], 1 }
 0xa5c   :  { %1619 = vsyncpa [#allocation16], 1 }
 0xa5d   :  { %1620 = vsyncpa [#allocation19], 1 }
 0xa5e   :  { %1621 = vsyncpa [#allocation5], 1 }
 0xa5f   :  { %1623 = vsyncpa [#allocation5 + $0x1], 1 }
 0xa60   :  { %1624 = vsyncpa [#allocation23], 1 }
 0xa61   :  { %1626 = vsyncpa [#allocation23 + $0x1], 1 }

</bundles_post_ra>
